<compile_context>
chip_gen: v7x
topology: tpu7x:2x2x1
jax: 0.10.0
libtpu: 0.0.40
codegen_flags: <defaults>
</compile_context>

<pallas_src>
import jax
import jax.numpy as jnp
from jax.experimental import pallas as pl
from jax.experimental.pallas import tpu as pltpu


# ----------------------------- config ("ini" values) -----------------------
ENCODE_DIM = 4      # char_enc_dim
FEAT_MAPS  = 8      # feature_maps
KSIZE      = 3      # ksize
FCL_SIZE   = 32     # fc_layer_size
NUM_CHARS  = 64     # num_chars (sequence length)
OUT_DIM    = 4
BATCH      = 2


def _conv_out_len(L, k):
    return L - k + 1


def _flat_fts():
    # Mirrors get_flat_fts(): conv1 -> pool(3) -> conv2 -> pool(3) -> conv3 -> conv4
    L = NUM_CHARS
    L = _conv_out_len(L, KSIZE) // 3        # conv1 + pool1
    L = _conv_out_len(L, KSIZE) // 3        # conv2 + pool2
    L = _conv_out_len(L, KSIZE)             # conv3
    L = _conv_out_len(L, KSIZE)             # conv4
    return FEAT_MAPS * L


FLAT_FTS = _flat_fts()


# ----------------------------- Pallas kernel -------------------------------
def deepcl_kernel(x_ref, convw_ref, convb_ref, fcw_ref, fcb_ref, out_ref):
    # x_ref: (B, 8, 64) f32, channels pre-padded 4->8 with zeros on the host.
    h = x_ref[...]

    def conv_relu(h, layer):
        # h: (B, 8, L). One contraction per layer:
        #   im2col stacks the K=3 taps along the channel (sublane) axis,
        #   then a single einsum against the (8, 24) packed weight.
        B, C, L = h.shape
        Lout = L - KSIZE + 1
        hs = jnp.concatenate(
            [h[:, :, k:k + Lout] for k in range(KSIZE)], axis=1)   # (B, C*K, Lout)
        w = convw_ref[layer]                                       # (Cout, C*K)
        b = convb_ref[layer]                                       # (Cout, 1)
        out = jnp.einsum("bkl,ok->bol", hs, w,
                         preferred_element_type=jnp.float32)       # (B, Cout, Lout)
        return jnp.maximum(out + b[None, :, :], 0.0)

    def maxpool3(h):
        # MaxPool1d(3): non-overlapping windows of 3, tail dropped (floor).
        B, C, L = h.shape
        Lp = (L // 3) * 3
        return jnp.max(h[:, :, :Lp].reshape(B, C, Lp // 3, 3), axis=-1)

    h = maxpool3(conv_relu(h, 0))
    h = maxpool3(conv_relu(h, 1))
    h = conv_relu(h, 2)
    h = conv_relu(h, 3)                     # (B, 8, 2)  == h_cam

    # Folded fc1∘fc2: weights pre-multiplied & pre-transposed on the host,
    # so the whole head is one (B, 16) @ (16, 4) matmul + bias.
    h_flat = h.reshape(h.shape[0], -1)      # (B, flat_fts); tiny (2,8,2) relayout
    y = jnp.dot(h_flat, fcw_ref[...],
                preferred_element_type=jnp.float32) + fcb_ref[...]
    out_ref[...] = y.astype(out_ref.dtype)


# ----------------------------- wrapper --------------------------------------
@jax.jit
def deepcl_forward(x, packed):
    convw, convb, fcw, fcb = packed
    B, cin, _ = x.shape
    if cin < FEAT_MAPS:                     # pad channels 4 -> 8 (zeros)
        x = jnp.pad(x, ((0, 0), (0, FEAT_MAPS - cin), (0, 0)))

    vmem = pl.BlockSpec(memory_space=pltpu.MemorySpace.VMEM)
    return pl.pallas_call(
        deepcl_kernel,
        out_shape=jax.ShapeDtypeStruct((B, OUT_DIM), jnp.float32),
        in_specs=[vmem] * 5,
        out_specs=vmem,
    )(x, convw, convb, fcw, fcb)


# ----------------------------- params, packing, reference -------------------
def init_params(key):
    """Torch-style (Conv1d / Linear) parameter shapes and init."""
    def uniform(k, shape, fan_in):
        bound = 1.0 / jnp.sqrt(jnp.float32(fan_in))
        return jax.random.uniform(k, shape, jnp.float32, -bound, bound)

    keys = jax.random.split(key, 12)
    w1 = uniform(keys[0], (FEAT_MAPS, ENCODE_DIM, KSIZE), ENCODE_DIM * KSIZE)
    b1 = uniform(keys[1], (FEAT_MAPS,), ENCODE_DIM * KSIZE)
    w2 = uniform(keys[2], (FEAT_MAPS, FEAT_MAPS, KSIZE), FEAT_MAPS * KSIZE)
    b2 = uniform(keys[3], (FEAT_MAPS,), FEAT_MAPS * KSIZE)
    w3 = uniform(keys[4], (FEAT_MAPS, FEAT_MAPS, KSIZE), FEAT_MAPS * KSIZE)
    b3 = uniform(keys[5], (FEAT_MAPS,), FEAT_MAPS * KSIZE)
    w4 = uniform(keys[6], (FEAT_MAPS, FEAT_MAPS, KSIZE), FEAT_MAPS * KSIZE)
    b4 = uniform(keys[7], (FEAT_MAPS,), FEAT_MAPS * KSIZE)
    fc1w = uniform(keys[8], (FCL_SIZE, FLAT_FTS), FLAT_FTS)
    fc1b = uniform(keys[9], (FCL_SIZE,), FLAT_FTS)
    fc2w = uniform(keys[10], (OUT_DIM, FCL_SIZE), FCL_SIZE)
    fc2b = uniform(keys[11], (OUT_DIM,), FCL_SIZE)
    return (w1, b1, w2, b2, w3, b3, w4, b4, fc1w, fc1b, fc2w, fc2b)


def pack_params(params):
    """Host-side one-time repack: im2col conv weights, folded/pre-transposed FC."""
    (w1, b1, w2, b2, w3, b3, w4, b4, fc1w, fc1b, fc2w, fc2b) = params

    def im2col_w(w):
        # (Cout, Cin, K) -> (Cout, K*FEAT_MAPS), index m = k*FEAT_MAPS + c,
        # with Cin zero-padded to FEAT_MAPS (matches zero-padded input channels).
        cout, cin, k = w.shape
        wt = jnp.transpose(w, (0, 2, 1))                    # (Cout, K, Cin)
        if cin < FEAT_MAPS:
            wt = jnp.pad(wt, ((0, 0), (0, 0), (0, FEAT_MAPS - cin)))
        return wt.reshape(cout, k * FEAT_MAPS)

    convw = jnp.stack([im2col_w(w1), im2col_w(w2), im2col_w(w3), im2col_w(w4)])
    convb = jnp.stack([b1, b2, b3, b4]).reshape(4, FEAT_MAPS, 1)

    # The torch module applies NO nonlinearity (and no dropout) between fc1 and
    # fc2, so the two linears fold into one: y = h @ (W1^T W2^T) + (b1 W2^T + b2).
    fcw = fc1w.T @ fc2w.T                                   # (FLAT_FTS, OUT_DIM)
    fcb = (fc1b @ fc2w.T + fc2b).reshape(1, OUT_DIM)
    return convw, convb, fcw, fcb


def reference_forward(x, params):
    """Pure-JAX reference matching torch semantics (validation only)."""
    (w1, b1, w2, b2, w3, b3, w4, b4, fc1w, fc1b, fc2w, fc2b) = params

    def conv1d(h, w, b):
        out = jax.lax.conv_general_dilated(
            h, w, window_strides=(1,), padding="VALID",
            dimension_numbers=("NCH", "OIH", "NCH"))
        return out + b[None, :, None]

    def pool3(h):
        B, C, L = h.shape
        Lp = (L // 3) * 3
        return jnp.max(h[:, :, :Lp].reshape(B, C, Lp // 3, 3), axis=-1)

    h = pool3(jax.nn.relu(conv1d(x, w1, b1)))
    h = pool3(jax.nn.relu(conv1d(h, w2, b2)))
    h = jax.nn.relu(conv1d(h, w3, b3))
    h = jax.nn.relu(conv1d(h, w4, b4))
    h = h.reshape(h.shape[0], -1)
    h = h @ fc1w.T + fc1b
    h = h @ fc2w.T + fc2b
    return h


# ----------------------------- main ------------------------------------------
if __name__ == "__main__":
    key = jax.random.PRNGKey(0)
    k_x, k_p = jax.random.split(key)
    x = jax.random.normal(k_x, (BATCH, ENCODE_DIM, NUM_CHARS), jnp.float32)
    params = init_params(k_p)
    packed = pack_params(params)

    out = jax.block_until_ready(deepcl_forward(x, packed))

    ref = reference_forward(x, params)
    assert out.shape == (BATCH, OUT_DIM), out.shape
    assert jnp.allclose(out, ref, atol=2e-4, rtol=2e-4), (out, ref)

    print("KERNEL_OK")
</pallas_src>

<mosaic_0001>
module attributes {stable_mosaic.version = 11 : i64} {
  func.func @deepcl_kernel(%arg0: memref<2x8x64xf32, #tpu.memory_space<vmem>>, %arg1: memref<4x8x24xf32, #tpu.memory_space<vmem>>, %arg2: memref<4x8x1xf32, #tpu.memory_space<vmem>>, %arg3: memref<16x4xf32, #tpu.memory_space<vmem>>, %arg4: memref<1x4xf32, #tpu.memory_space<vmem>>, %arg5: memref<2x4xf32, #tpu.memory_space<vmem>>) attributes {dimension_semantics = [], scalar_prefetch = 0 : i64, scratch_operands = 0 : i64, tpu.core_type = #tpu.core_type<tc>} {
    %c0 = arith.constant 0 : index
    %c0_0 = arith.constant 0 : index
    %c0_1 = arith.constant 0 : index
    %0 = vector.load %arg0[%c0, %c0_0, %c0_1] : memref<2x8x64xf32, #tpu.memory_space<vmem>>, vector<2x8x64xf32>
    %1 = vector.extract_strided_slice %0 {offsets = [0, 0, 0], sizes = [2, 8, 62], strides = [1, 1, 1]} : vector<2x8x64xf32> to vector<2x8x62xf32>
    %2 = vector.extract_strided_slice %0 {offsets = [0, 0, 1], sizes = [2, 8, 62], strides = [1, 1, 1]} : vector<2x8x64xf32> to vector<2x8x62xf32>
    %3 = vector.extract_strided_slice %0 {offsets = [0, 0, 2], sizes = [2, 8, 62], strides = [1, 1, 1]} : vector<2x8x64xf32> to vector<2x8x62xf32>
    %4 = tpu.concatenate %1, %2, %3 in 1 : vector<2x8x62xf32>, vector<2x8x62xf32>, vector<2x8x62xf32> -> vector<2x24x62xf32>
    %c0_2 = arith.constant 0 : index
    %c0_3 = arith.constant 0 : index
    %c0_4 = arith.constant 0 : index
    %5 = vector.load %arg1[%c0_2, %c0_3, %c0_4] : memref<4x8x24xf32, #tpu.memory_space<vmem>>, vector<1x8x24xf32>
    %6 = vector.shape_cast %5 : vector<1x8x24xf32> to vector<8x24xf32>
    %c0_5 = arith.constant 0 : index
    %c0_6 = arith.constant 0 : index
    %c0_7 = arith.constant 0 : index
    %7 = vector.load %arg2[%c0_5, %c0_6, %c0_7] : memref<4x8x1xf32, #tpu.memory_space<vmem>>, vector<1x8x1xf32>
    %8 = vector.shape_cast %7 : vector<1x8x1xf32> to vector<8x1xf32>
    "tpu.trace_start"() <{level = 10 : i32, message = "bkl,ok->bol"}> : () -> ()
    %cst = arith.constant dense<0.000000e+00> : vector<8x2x62xf32>
    %9 = tpu.matmul %6, %4, %cst {dimension_numbers = #tpu.dot_dimension_numbers<[1], [1], [0], [0, 2], [0, 0, 1, 0, 1, 2], [], []>} : vector<8x24xf32>, vector<2x24x62xf32>, vector<8x2x62xf32> -> vector<8x2x62xf32>
    %10 = tpu.transpose %9, [1, 0, 2] : vector<8x2x62xf32> -> vector<2x8x62xf32>
    "tpu.trace_stop"() : () -> ()
    %11 = vector.shape_cast %8 : vector<8x1xf32> to vector<1x8x1xf32>
    %12 = vector.broadcast %11 : vector<1x8x1xf32> to vector<2x8x62xf32>
    %13 = arith.addf %10, %12 : vector<2x8x62xf32>
    %cst_8 = arith.constant 0.000000e+00 : f32
    %14 = vector.broadcast %cst_8 : f32 to vector<2x8x62xf32>
    %15 = arith.maximumf %13, %14 : vector<2x8x62xf32>
    %16 = vector.extract_strided_slice %15 {offsets = [0, 0, 0], sizes = [2, 8, 60], strides = [1, 1, 1]} : vector<2x8x62xf32> to vector<2x8x60xf32>
    %17 = vector.shape_cast %16 : vector<2x8x60xf32> to vector<2x8x20x3xf32>
    %cst_9 = arith.constant dense<0xFF800000> : vector<2x8x20xf32>
    %18 = vector.multi_reduction <maximumf>, %17, %cst_9 [3] : vector<2x8x20x3xf32> to vector<2x8x20xf32>
    %19 = vector.extract_strided_slice %18 {offsets = [0, 0, 0], sizes = [2, 8, 18], strides = [1, 1, 1]} : vector<2x8x20xf32> to vector<2x8x18xf32>
    %20 = vector.extract_strided_slice %18 {offsets = [0, 0, 1], sizes = [2, 8, 18], strides = [1, 1, 1]} : vector<2x8x20xf32> to vector<2x8x18xf32>
    %21 = vector.extract_strided_slice %18 {offsets = [0, 0, 2], sizes = [2, 8, 18], strides = [1, 1, 1]} : vector<2x8x20xf32> to vector<2x8x18xf32>
    %22 = tpu.concatenate %19, %20, %21 in 1 : vector<2x8x18xf32>, vector<2x8x18xf32>, vector<2x8x18xf32> -> vector<2x24x18xf32>
    %c1 = arith.constant 1 : index
    %c0_10 = arith.constant 0 : index
    %c0_11 = arith.constant 0 : index
    %23 = vector.load %arg1[%c1, %c0_10, %c0_11] : memref<4x8x24xf32, #tpu.memory_space<vmem>>, vector<1x8x24xf32>
    %24 = vector.shape_cast %23 : vector<1x8x24xf32> to vector<8x24xf32>
    %c1_12 = arith.constant 1 : index
    %c0_13 = arith.constant 0 : index
    %c0_14 = arith.constant 0 : index
    %25 = vector.load %arg2[%c1_12, %c0_13, %c0_14] : memref<4x8x1xf32, #tpu.memory_space<vmem>>, vector<1x8x1xf32>
    %26 = vector.shape_cast %25 : vector<1x8x1xf32> to vector<8x1xf32>
    "tpu.trace_start"() <{level = 10 : i32, message = "bkl,ok->bol"}> : () -> ()
    %cst_15 = arith.constant dense<0.000000e+00> : vector<8x2x18xf32>
    %27 = tpu.matmul %24, %22, %cst_15 {dimension_numbers = #tpu.dot_dimension_numbers<[1], [1], [0], [0, 2], [0, 0, 1, 0, 1, 2], [], []>} : vector<8x24xf32>, vector<2x24x18xf32>, vector<8x2x18xf32> -> vector<8x2x18xf32>
    %28 = tpu.transpose %27, [1, 0, 2] : vector<8x2x18xf32> -> vector<2x8x18xf32>
    "tpu.trace_stop"() : () -> ()
    %29 = vector.shape_cast %26 : vector<8x1xf32> to vector<1x8x1xf32>
    %30 = vector.broadcast %29 : vector<1x8x1xf32> to vector<2x8x18xf32>
    %31 = arith.addf %28, %30 : vector<2x8x18xf32>
    %cst_16 = arith.constant 0.000000e+00 : f32
    %32 = vector.broadcast %cst_16 : f32 to vector<2x8x18xf32>
    %33 = arith.maximumf %31, %32 : vector<2x8x18xf32>
    %34 = vector.shape_cast %33 : vector<2x8x18xf32> to vector<2x8x6x3xf32>
    %cst_17 = arith.constant dense<0xFF800000> : vector<2x8x6xf32>
    %35 = vector.multi_reduction <maximumf>, %34, %cst_17 [3] : vector<2x8x6x3xf32> to vector<2x8x6xf32>
    %36 = vector.extract_strided_slice %35 {offsets = [0, 0, 0], sizes = [2, 8, 4], strides = [1, 1, 1]} : vector<2x8x6xf32> to vector<2x8x4xf32>
    %37 = vector.extract_strided_slice %35 {offsets = [0, 0, 1], sizes = [2, 8, 4], strides = [1, 1, 1]} : vector<2x8x6xf32> to vector<2x8x4xf32>
    %38 = vector.extract_strided_slice %35 {offsets = [0, 0, 2], sizes = [2, 8, 4], strides = [1, 1, 1]} : vector<2x8x6xf32> to vector<2x8x4xf32>
    %39 = tpu.concatenate %36, %37, %38 in 1 : vector<2x8x4xf32>, vector<2x8x4xf32>, vector<2x8x4xf32> -> vector<2x24x4xf32>
    %c2 = arith.constant 2 : index
    %c0_18 = arith.constant 0 : index
    %c0_19 = arith.constant 0 : index
    %40 = vector.load %arg1[%c2, %c0_18, %c0_19] : memref<4x8x24xf32, #tpu.memory_space<vmem>>, vector<1x8x24xf32>
    %41 = vector.shape_cast %40 : vector<1x8x24xf32> to vector<8x24xf32>
    %c2_20 = arith.constant 2 : index
    %c0_21 = arith.constant 0 : index
    %c0_22 = arith.constant 0 : index
    %42 = vector.load %arg2[%c2_20, %c0_21, %c0_22] : memref<4x8x1xf32, #tpu.memory_space<vmem>>, vector<1x8x1xf32>
    %43 = vector.shape_cast %42 : vector<1x8x1xf32> to vector<8x1xf32>
    "tpu.trace_start"() <{level = 10 : i32, message = "bkl,ok->bol"}> : () -> ()
    %cst_23 = arith.constant dense<0.000000e+00> : vector<8x2x4xf32>
    %44 = tpu.matmul %41, %39, %cst_23 {dimension_numbers = #tpu.dot_dimension_numbers<[1], [1], [0], [0, 2], [0, 0, 1, 0, 1, 2], [], []>} : vector<8x24xf32>, vector<2x24x4xf32>, vector<8x2x4xf32> -> vector<8x2x4xf32>
    %45 = tpu.transpose %44, [1, 0, 2] : vector<8x2x4xf32> -> vector<2x8x4xf32>
    "tpu.trace_stop"() : () -> ()
    %46 = vector.shape_cast %43 : vector<8x1xf32> to vector<1x8x1xf32>
    %47 = vector.broadcast %46 : vector<1x8x1xf32> to vector<2x8x4xf32>
    %48 = arith.addf %45, %47 : vector<2x8x4xf32>
    %cst_24 = arith.constant 0.000000e+00 : f32
    %49 = vector.broadcast %cst_24 : f32 to vector<2x8x4xf32>
    %50 = arith.maximumf %48, %49 : vector<2x8x4xf32>
    %51 = vector.extract_strided_slice %50 {offsets = [0, 0, 0], sizes = [2, 8, 2], strides = [1, 1, 1]} : vector<2x8x4xf32> to vector<2x8x2xf32>
    %52 = vector.extract_strided_slice %50 {offsets = [0, 0, 1], sizes = [2, 8, 2], strides = [1, 1, 1]} : vector<2x8x4xf32> to vector<2x8x2xf32>
    %53 = vector.extract_strided_slice %50 {offsets = [0, 0, 2], sizes = [2, 8, 2], strides = [1, 1, 1]} : vector<2x8x4xf32> to vector<2x8x2xf32>
    %54 = tpu.concatenate %51, %52, %53 in 1 : vector<2x8x2xf32>, vector<2x8x2xf32>, vector<2x8x2xf32> -> vector<2x24x2xf32>
    %c3 = arith.constant 3 : index
    %c0_25 = arith.constant 0 : index
    %c0_26 = arith.constant 0 : index
    %55 = vector.load %arg1[%c3, %c0_25, %c0_26] : memref<4x8x24xf32, #tpu.memory_space<vmem>>, vector<1x8x24xf32>
    %56 = vector.shape_cast %55 : vector<1x8x24xf32> to vector<8x24xf32>
    %c3_27 = arith.constant 3 : index
    %c0_28 = arith.constant 0 : index
    %c0_29 = arith.constant 0 : index
    %57 = vector.load %arg2[%c3_27, %c0_28, %c0_29] : memref<4x8x1xf32, #tpu.memory_space<vmem>>, vector<1x8x1xf32>
    %58 = vector.shape_cast %57 : vector<1x8x1xf32> to vector<8x1xf32>
    "tpu.trace_start"() <{level = 10 : i32, message = "bkl,ok->bol"}> : () -> ()
    %cst_30 = arith.constant dense<0.000000e+00> : vector<8x2x2xf32>
    %59 = tpu.matmul %56, %54, %cst_30 {dimension_numbers = #tpu.dot_dimension_numbers<[1], [1], [0], [0, 2], [0, 0, 1, 0, 1, 2], [], []>} : vector<8x24xf32>, vector<2x24x2xf32>, vector<8x2x2xf32> -> vector<8x2x2xf32>
    %60 = tpu.transpose %59, [1, 0, 2] : vector<8x2x2xf32> -> vector<2x8x2xf32>
    "tpu.trace_stop"() : () -> ()
    %61 = vector.shape_cast %58 : vector<8x1xf32> to vector<1x8x1xf32>
    %62 = vector.broadcast %61 : vector<1x8x1xf32> to vector<2x8x2xf32>
    %63 = arith.addf %60, %62 : vector<2x8x2xf32>
    %cst_31 = arith.constant 0.000000e+00 : f32
    %64 = vector.broadcast %cst_31 : f32 to vector<2x8x2xf32>
    %65 = arith.maximumf %63, %64 : vector<2x8x2xf32>
    %66 = vector.shape_cast %65 : vector<2x8x2xf32> to vector<2x16xf32>
    %c0_32 = arith.constant 0 : index
    %c0_33 = arith.constant 0 : index
    %67 = vector.load %arg3[%c0_32, %c0_33] : memref<16x4xf32, #tpu.memory_space<vmem>>, vector<16x4xf32>
    %cst_34 = arith.constant dense<0.000000e+00> : vector<2x4xf32>
    %68 = tpu.matmul %66, %67, %cst_34 {dimension_numbers = #tpu.dot_dimension_numbers<[1], [0], [0], [1], [0, 0, 1, 1], [], []>} : vector<2x16xf32>, vector<16x4xf32>, vector<2x4xf32> -> vector<2x4xf32>
    %c0_35 = arith.constant 0 : index
    %c0_36 = arith.constant 0 : index
    %69 = vector.load %arg4[%c0_35, %c0_36] : memref<1x4xf32, #tpu.memory_space<vmem>>, vector<1x4xf32>
    %70 = vector.broadcast %69 : vector<1x4xf32> to vector<2x4xf32>
    %71 = arith.addf %68, %70 : vector<2x4xf32>
    %c0_37 = arith.constant 0 : index
    %c0_38 = arith.constant 0 : index
    %72 = vector.load %arg5[%c0_37, %c0_38] : memref<2x4xf32, #tpu.memory_space<vmem>>, vector<2x4xf32>
    tpu.vector_store %arg5[%c0_37, %c0_38], %71 {strides = array<i32>} : memref<2x4xf32, #tpu.memory_space<vmem>>, vector<2x4xf32>,
    return
  }
}

</mosaic_0001>

<bundles_post_ra>
// kernel: deepcl_forward.1
= control target key start
LH: loop header
LB: loop body
LE: loop exit
PB: predicated region body
PF: predicated region fallthrough
CT: control target
= control target key end

     0   :  { %v6725_v1 = vlaneseq  ;;  %v5118_v2 = vmov 1983009808   ;;  %s5119_s20 = smov 126   ;;  %s5120_s21 = smov 127   ;;  %v5121_v6 = vmov 1934713408   ;;  %s6717_s0 = inlined_call_operand.vmem [shape: f32[2,8,64], index: 0, kind: input, shape index: {}]   ;;  %s6718_s1 = inlined_call_operand.vmem [shape: f32[4,8,24], index: 1, kind: input, shape index: {}]   ;;  %s6719_s2 = inlined_call_operand.vmem [shape: f32[4,8,1], index: 2, kind: input, shape index: {}]   ;;  %s6720_s3 = inlined_call_operand.vmem [shape: f32[16,4], index: 3, kind: input, shape index: {}]   ;;  %s6721_s4 = inlined_call_operand.vmem [shape: f32[1,4], index: 4, kind: input, shape index: {}]   ;;  %s6722_s5 = inlined_call_operand.hbm [shape: f32[2,4], index: 5, kind: output, shape index: {}]  }
   0x1   :  { %v21_v0 = vld [vmem:[%s6717_s0] sm:$0xff]  ;;  %v49_v3 = vunpack.c.l.s4 %v5118_v2  ;;  %v22_v5 = vld [vmem:[%s6717_s0 + $0x8] sm:$0xff]  ;;  %v74_v7 = vunpack.c.l.s4 %v5121_v6 }
   0x2   :  { %31 = vrot.lane.b32.xlu1 %v21_v0, %s5119_s20  ;;  %25 = vrot.lane.b32.xlu0 %v21_v0, %s5120_s21  ;;  %v5193_v4 = vshrl.u32 %v6725_v1, 7 }
   0x4   :  { %6744 = vst [vmem:[#allocation5_spill] sm:$0xff] %v5193_v4 }
   0x5   :  { %10 = vsyncpa [#allocation3], 0  ;;  %v50_v8 = vunpack.c.0.s8 %v49_v3  ;;  %v6726_v9 = vmov 0.0   ;;  %v75_v13 = vunpack.c.0.s8 %v74_v7  ;;  %v4910_v26 = vld.sshfl [vmem:[%s6717_s0] sm:$0xff pattern:$0x76325410] }
   0x6   :  { %v40_v10 = vcombine.high %v21_v0, %v6726_v9  ;;  %v56_v11 = vcombine.high %v22_v5, %v6726_v9  ;;  %33 = vrot.lane.b32.xlu1 %v22_v5, %s5119_s20  ;;  %27 = vrot.lane.b32.xlu0 %v22_v5, %s5120_s21  ;;  %v4911_v27 = vld.sshfl [vmem:[%s6717_s0 + $0x8] sm:$0xff pattern:$0x76325410]  ;;  %vm5124_vm0 = vmmov 0   ;;  %s5125_s0 = smov 62   ;;  %vm401_vm1 = vcmask 506880  }
   0x7   :  { %v5201_v12 = vsub.s32 %v50_v8, %v5193_v4  ;;  %v5208_v16 = vsub.s32 %v75_v13, %v5193_v4  ;;  %v71_v28 = vcombine.low %v4910_v26, %v4911_v27  ;;  %v72_v29 = vcombine.high %v4910_v26, %v4911_v27  ;;  %4981 = vmatprep.mubr.msk.f32.mxu0 %vm5124_vm0, %v6726_v9  ;;  %s5127_s7 = smov 66   ;;  %s5128_s8 = smov 122  }
   0x8   :  { %4990 = vmatprep.mubr.msk.f32.mxu1 %vm5124_vm0, %v6726_v9  ;;  %vm428_vm2 = vcmask 195584   ;;  %s5129_s9 = smov 125   ;;  %s5130_s10 = smov 119   ;;  %vm1434_vm3 = vcmask 19456   ;;  %v6757_v4 = vmov 0.0   ;;  %vm1427_vm4 = vcmask 23552  }
   0x9   :  { %v54_v14 = vrot.slane %v40_v10, %v5201_v12  ;;  %v70_v15 = vrot.slane %v56_v11, %v5201_v12  ;;  %v79_v30 = vrot.slane %v71_v28, %v5208_v16  ;;  %v86_v31 = vrot.slane %v72_v29, %v5208_v16  ;;  %s5131_s11 = smov 116   ;;  %s5132_s12 = smov 113  }
   0xa   :  { %s5133_s13 = smov 110   ;;  %s5134_s14 = smov 107   ;;  %vm1632_vm5 = vcmask 130112   ;;  %vm1884_vm6 = vcmask 121912   ;;  %vm1639_vm7 = vcmask 195712   ;;  %vm2129_vm8 = vcmask 113712  }
   0xb   :  { %v87_v17 = vcombine.low %v54_v14, %v70_v15  ;;  %v88_v18 = vcombine.high %v54_v14, %v70_v15  ;;  %v239_v32 = vcombine.low %v79_v30, %v86_v31  ;;  %v4912_v33 = vcombine.high %v79_v30, %v86_v31  ;;  %s5135_s15 = smov 104   ;;  %s5136_s16 = smov 101  }
   0xc   :  { %v6723_v31 = vmov 0.0|0.0   ;;  %s5137_s17 = smov 98   ;;  %s5138_s18 = smov 95   ;;  %vm1891_vm9 = vcmask 187512   ;;  %vm2136_vm10 = vcmask 179312   ;;  %vm1851_vm11 = vcmask 1041409  }
   0xd   :  { %v95_v19 = vrot.slane %v87_v17, %v5208_v16  ;;  %v102_v20 = vrot.slane %v88_v18, %v5208_v16  ;;  %v246_v36 = vrot.slane %v239_v32, %v5201_v12  ;;  %v254_v37 = vrot.slane %v4912_v33, %v5201_v12  ;;  %5018 = vmatprep.subr.bf16.mxu0 %v6723_v31  ;;  %s5139_s19 = smov 92   ;;  %s5140_s22 = smov 89  }
   0xe   :  { %5021 = vmatprep.subr.bf16.mxu1 %v6723_v31  ;;  %s5141_s23 = smov 86   ;;  %s5142_s24 = smov 83   ;;  %vm1853_vm12 = vcmask 1042434   ;;  %vm1855_vm13 = vcmask 1043459   ;;  %vm1857_vm14 = vcmask 1044484   ;;  %vm1859_vm15 = vcmask 1045509  }
   0xf   :  { %v255_v21 = vcombine.low %v95_v19, %v102_v20  ;;  %v4913_v22 = vcombine.high %v95_v19, %v102_v20  ;;  %v271_v44 = vcombine.low %v246_v36, %v254_v37  ;;  %s5143_s25 = smov 80   ;;  %s5144_s26 = smov 77  }
  0x10   :  { %s5145_s27 = smov 74   ;;  %s5147_s28 = smov 18  }
  0x11   :  { %v5213_v23 = vrot.slane %v255_v21, %v5201_v12  ;;  %v270_v24 = vrot.slane %v4913_v22, %v5201_v12  ;;  %v5240_v57 = vrot.slane %v271_v44, %v5208_v16 }
  0x13   :  { %v279_v25 = vcombine.low %v5213_v23, %v270_v24 }
  0x15   :  { %v286_v27 = vrot.slane %v279_v25, %v5208_v16 }
  0x17   :  { %v288_v36 = vcombine.high %v5240_v57, %v286_v27 }
  0x74   :  { %v32_v34 = vpop.permute.xlu1 %31  ;;  %v26_v35 = vpop.permute.xlu0 %25 }
  0x75   :  { %v173_v38 = vcombine.high %v32_v34, %v6726_v9  ;;  %v180_v39 = vrot.slane %v32_v34, %v5201_v12  ;;  %v107_v41 = vcombine.high %v26_v35, %v6726_v9  ;;  %v114_v49 = vrot.slane %v26_v35, %v5201_v12 }
  0x77   :  { %v187_v40 = vrot.slane %v173_v38, %v5201_v12  ;;  %v121_v54 = vrot.slane %v107_v41, %v5201_v12 }
  0x78   :  { %v34_v42 = vpop.permute.xlu1 %33  ;;  %v28_v43 = vpop.permute.xlu0 %27 }
  0x79   :  { %v188_v45 = vcombine.high %v34_v42, %v6726_v9  ;;  %v195_v46 = vrot.slane %v34_v42, %v5201_v12  ;;  %v122_v47 = vcombine.high %v28_v43, %v6726_v9  ;;  %v129_v48 = vrot.slane %v28_v43, %v5201_v12 }
  0x7a   :  { %v405_v42 = vcombine.low %v6726_v9, %v6726_v9 }
  0x7b   :  { %v202_v50 = vrot.slane %v188_v45, %v5201_v12  ;;  %v203_v51 = vcombine.low %v180_v39, %v195_v46  ;;  %v204_v52 = vcombine.high %v180_v39, %v195_v46  ;;  %v136_v53 = vrot.slane %v122_v47, %v5201_v12 }
  0x7c   :  { %v137_v55 = vcombine.low %v114_v49, %v129_v48  ;;  %v138_v56 = vcombine.high %v114_v49, %v129_v48  ;;  %v412_v44 = vrot.slane %v405_v42, %v5201_v12  ;;  %v287_v48 = vcombine.low %v5240_v57, %v286_v27 }
  0x7d   :  { %v211_v58 = vrot.slane %v203_v51, %v5208_v16  ;;  %v218_v59 = vrot.slane %v204_v52, %v5208_v16  ;;  %v219_v60 = vcombine.low %v187_v40, %v202_v50  ;;  %v220_v61 = vcombine.high %v187_v40, %v202_v50 }
  0x7e   :  { %v145_v62 = vrot.slane %v137_v55, %v5208_v16  ;;  %v152_v63 = vrot.slane %v138_v56, %v5208_v16  ;;  %v153_v0 = vcombine.low %v121_v54, %v136_v53  ;;  %v154_v2 = vcombine.high %v121_v54, %v136_v53  ;;  %v37_v56 = vld [vmem:[%s6718_s1] sm:$0xff] }
  0x7f   :  { %v227_v3 = vrot.slane %v219_v60, %v5208_v16  ;;  %v234_v5 = vrot.slane %v220_v61, %v5208_v16  ;;  %v339_v6 = vcombine.low %v211_v58, %v218_v59  ;;  %v4916_v7 = vcombine.high %v211_v58, %v218_v59  ;;  %v38_v58 = vld [vmem:[%s6719_s2] sm:$0xff] }
  0x80   :  { %v161_v8 = vrot.slane %v153_v0, %v5208_v16  ;;  %v168_v10 = vrot.slane %v154_v2, %v5208_v16  ;;  %v289_v11 = vcombine.low %v145_v62, %v152_v63  ;;  %v4914_v13 = vcombine.high %v145_v62, %v152_v63 }
  0x81   :  { %v355_v14 = vcombine.low %v227_v3, %v234_v5  ;;  %v4917_v15 = vcombine.high %v227_v3, %v234_v5  ;;  %v346_v17 = vrot.slane %v339_v6, %v5201_v12  ;;  %v354_v18 = vrot.slane %v4916_v7, %v5201_v12 }
  0x82   :  { %v296_v19 = vrot.slane %v289_v11, %v5201_v12  ;;  %v304_v20 = vrot.slane %v4914_v13, %v5201_v12  ;;  %v305_v21 = vcombine.low %v161_v8, %v168_v10  ;;  %v4915_v22 = vcombine.high %v161_v8, %v168_v10 }
  0x83   :  { %v362_v23 = vrot.slane %v355_v14, %v5201_v12  ;;  %v370_v24 = vrot.slane %v4917_v15, %v5201_v12  ;;  %v371_v26 = vcombine.low %v346_v17, %v354_v18  ;;  %v413_v45 = vcombine.low %v412_v44, %v412_v44 }
  0x84   :  { %v312_v28 = vrot.slane %v305_v21, %v5201_v12  ;;  %v320_v29 = vrot.slane %v4915_v22, %v5201_v12  ;;  %v321_v30 = vcombine.low %v296_v19, %v304_v20  ;;  %v5126_v59 = vmov 0  }
  0x85   :  { %v378_v32 = vrot.slane %v371_v26, %v5208_v16  ;;  %v379_v33 = vcombine.low %v362_v23, %v370_v24  ;;  %v420_v46 = vrot.slane %v413_v45, %v5208_v16  ;;  %5077 = vset.pattern.permute.xlu0 %v5126_v59  ;;  %5088 = vset.pattern.permute.xlu1 %v5126_v59 }
  0x86   :  { %v329_v34 = vcombine.low %v312_v28, %v320_v29  ;;  %v328_v25 = vrot.slane %v321_v30, %v5208_v16 }
  0x87   :  { %v386_v35 = vrot.slane %v379_v33, %v5208_v16  ;;  %v5274_v47 = vcombine.high %v420_v46, %v420_v46  ;;  %v5292_v60 = vcombine.low %v420_v46, %v420_v46 }
  0x88   :  { %v336_v37 = vrot.slane %v329_v34, %v5208_v16 }
  0x89   :  { %v388_v38 = vcombine.high %v378_v32, %v386_v35  ;;  %v387_v39 = vcombine.low %v378_v32, %v386_v35  ;;  %6745 = vst [vmem:[#allocation6_spill] sm:$0xff] %v5274_v47  ;;  %6746 = vst [vmem:[#allocation7_spill] sm:$0xff] %v5292_v60 }
  0x8a   :  { %v338_v40 = vcombine.high %v328_v25, %v336_v37  ;;  %v337_v41 = vcombine.low %v328_v25, %v336_v37 }
  0x8b   :  { %396 = vrot.lane.b32.xlu1 %v388_v38, %s5125_s0 }
  0x8c   :  { %v5072_v43 = vpack.i.bf16 %v338_v40, %v288_v36 }
  0x8e   :  { %5073 = vrot.lane.b32.xlu0 %v5072_v43, %s5125_s0 }
  0x92   :  { %424 = vrot.lane.b32.xlu0 %v5274_v47, %s5125_s0  ;;  %s5146_s0 = smov 71  }
  0x96   :  { %624 = vperm.xlu0 %5077, %v38_v58  }
  0xfd   :  { %v397_v55 = vpop.permute.xlu1 %396 }
  0xfe   :  { %v404_v57 = vsel %vm401_vm1, %v387_v39, %v397_v55 }
 0x100   :  { %v5074_v49 = vpop.permute.xlu0 %5073 }
 0x101   :  { %v5076_v50 = vunpack.i.h.bf16 %v5074_v49  ;;  %v5075_v51 = vunpack.i.l.bf16 %v5074_v49 }
 0x103   :  { %v402_v52 = vsel %vm401_vm1, %v287_v48, %v5075_v51  ;;  %v403_v53 = vsel %vm401_vm1, %v337_v41, %v5076_v50 }
 0x104   :  { %v5019_v54 = vpack.c.bf16 %v403_v53, %v402_v52  ;;  %v425_v61 = vpop.permute.xlu0 %424 }
 0x105   :  { %v427_v62 = vsel %vm401_vm1, %v5292_v60, %v425_v61  ;;  %vm1861_vm1 = vcmask 1046534  }
 0x106   :  { %5020 = vmatpush3.bf16.msra.mxu0 %v5019_v54 }
 0x107   :  { %4979 = vmatprep.subr.mxu0 %v6726_v9 }
 0x10a   :  { %4980 = vmatpush3.msra.mxu0 %v404_v57 }
 0x10b   :  { %4982 = vmatmul.mubr.msk.f32.vlgmr.msra.gmra.mrb[0].mxu0 %vm428_vm2, %v37_v56  ;;  %5024 = vmatprep.subr.bf16.mxu0 %v6723_v31 }
 0x10c   :  { %4999 = vmatprep.mubr.msk.f32.mxu0 %vm5124_vm0, %v6726_v9 }
 0x115   :  { %v625_v36 = vpop.permute.xlu0 %624 }
 0x1de   :  { %v498_v63 = vpop.f32.mrb[0].mxu0 }
 0x1df   :  { %v499_v0 = vadd.f32 %v498_v63, %v427_v62  ;;  %v4983_v2 = vpop.f32.mrb[1].mxu0 }
 0x1e1   :  { %503 = vrot.lane.b32.xlu1 %v499_v0, %s5127_s7  ;;  %v506_v3 = vcombine.high %v499_v0, %v6726_v9  ;;  %v513_v6 = vrot.slane %v499_v0, %v5201_v12 }
 0x1e3   :  { %v520_v10 = vrot.slane %v506_v3, %v5201_v12 }
 0x253   :  { %v504_v5 = vpop.permute.xlu1 %503 }
 0x254   :  { %v521_v7 = vcombine.high %v504_v5, %v6726_v9  ;;  %v528_v8 = vrot.slane %v504_v5, %v5201_v12 }
 0x256   :  { %v535_v11 = vrot.slane %v521_v7, %v5201_v12  ;;  %v536_v13 = vcombine.low %v513_v6, %v528_v8  ;;  %v537_v14 = vcombine.high %v513_v6, %v528_v8 }
 0x258   :  { %v544_v15 = vrot.slane %v536_v13, %v5208_v16  ;;  %v551_v17 = vrot.slane %v537_v14, %v5208_v16  ;;  %v552_v18 = vcombine.low %v520_v10, %v535_v11  ;;  %v553_v19 = vcombine.high %v520_v10, %v535_v11 }
 0x25a   :  { %v560_v20 = vrot.slane %v552_v18, %v5208_v16  ;;  %v567_v21 = vrot.slane %v553_v19, %v5208_v16  ;;  %v572_v22 = vcombine.low %v544_v15, %v551_v17  ;;  %v4919_v23 = vcombine.high %v544_v15, %v551_v17 }
 0x25c   :  { %v588_v24 = vcombine.low %v560_v20, %v567_v21  ;;  %v4920_v26 = vcombine.high %v560_v20, %v567_v21  ;;  %v579_v27 = vrot.slane %v572_v22, %v5201_v12  ;;  %v587_v28 = vrot.slane %v4919_v23, %v5201_v12 }
 0x25e   :  { %v595_v29 = vrot.slane %v588_v24, %v5201_v12  ;;  %v603_v30 = vrot.slane %v4920_v26, %v5201_v12  ;;  %v604_v32 = vcombine.low %v579_v27, %v587_v28 }
 0x260   :  { %v612_v33 = vcombine.low %v595_v29, %v603_v30  ;;  %v611_v34 = vrot.slane %v604_v32, %v5208_v16 }
 0x262   :  { %v619_v35 = vrot.slane %v612_v33, %v5208_v16 }
 0x264   :  { %v620_v25 = vcombine.low %v611_v34, %v619_v35  ;;  %v621_v37 = vcombine.high %v611_v34, %v619_v35 }
 0x266   :  { %v627_v38 = vadd.f32 %v625_v36, %v620_v25  ;;  %v628_v39 = vadd.f32 %v625_v36, %v621_v37 }
 0x268   :  { %v5312_v40 = vmax.f32 %v627_v38, 0.0  ;;  %v5318_v41 = vmax.f32 %v628_v39, 0.0 }
 0x26a   :  { %6747 = vst [vmem:[#allocation8_spill] sm:$0xff] %v5312_v40  ;;  %639 = vrot.lane.b32.xlu0 %v5312_v40, %s5128_s8  ;;  %633 = vrot.lane.b32.xlu1 %v5312_v40, %s5129_s9 }
 0x26e   :  { %645 = vrot.lane.b32.xlu0 %v5312_v40, %s5130_s10  ;;  %635 = vrot.lane.b32.xlu1 %v5318_v41, %s5129_s9 }
 0x272   :  { %651 = vrot.lane.b32.xlu0 %v5312_v40, %s5131_s11  ;;  %641 = vrot.lane.b32.xlu1 %v5318_v41, %s5128_s8 }
 0x276   :  { %657 = vrot.lane.b32.xlu0 %v5312_v40, %s5132_s12  ;;  %647 = vrot.lane.b32.xlu1 %v5318_v41, %s5130_s10 }
 0x27a   :  { %663 = vrot.lane.b32.xlu0 %v5312_v40, %s5133_s13  ;;  %653 = vrot.lane.b32.xlu1 %v5318_v41, %s5131_s11 }
 0x27e   :  { %669 = vrot.lane.b32.xlu0 %v5312_v40, %s5134_s14  ;;  %659 = vrot.lane.b32.xlu1 %v5318_v41, %s5132_s12 }
 0x282   :  { %675 = vrot.lane.b32.xlu0 %v5312_v40, %s5135_s15  ;;  %665 = vrot.lane.b32.xlu1 %v5318_v41, %s5133_s13 }
 0x286   :  { %681 = vrot.lane.b32.xlu0 %v5312_v40, %s5136_s16  ;;  %671 = vrot.lane.b32.xlu1 %v5318_v41, %s5134_s14 }
 0x28a   :  { %687 = vrot.lane.b32.xlu0 %v5312_v40, %s5137_s17  ;;  %677 = vrot.lane.b32.xlu1 %v5318_v41, %s5135_s15 }
 0x28e   :  { %693 = vrot.lane.b32.xlu0 %v5312_v40, %s5138_s18  ;;  %683 = vrot.lane.b32.xlu1 %v5318_v41, %s5136_s16 }
 0x292   :  { %699 = vrot.lane.b32.xlu0 %v5312_v40, %s5139_s19  ;;  %689 = vrot.lane.b32.xlu1 %v5318_v41, %s5137_s17 }
 0x296   :  { %705 = vrot.lane.b32.xlu0 %v5312_v40, %s5140_s22  ;;  %695 = vrot.lane.b32.xlu1 %v5318_v41, %s5138_s18 }
 0x29a   :  { %711 = vrot.lane.b32.xlu0 %v5312_v40, %s5141_s23  ;;  %701 = vrot.lane.b32.xlu1 %v5318_v41, %s5139_s19  ;;  %s5151_s19 = smov 8  }
 0x29e   :  { %717 = vrot.lane.b32.xlu0 %v5312_v40, %s5142_s24  ;;  %707 = vrot.lane.b32.xlu1 %v5318_v41, %s5140_s22  ;;  %s5153_s22 = smov 12  }
 0x2a2   :  { %723 = vrot.lane.b32.xlu0 %v5312_v40, %s5143_s25  ;;  %713 = vrot.lane.b32.xlu1 %v5318_v41, %s5141_s23  ;;  %s5154_s23 = smov 10  }
 0x2a6   :  { %729 = vrot.lane.b32.xlu0 %v5312_v40, %s5144_s26  ;;  %719 = vrot.lane.b32.xlu1 %v5318_v41, %s5142_s24  ;;  %s5155_s24 = smov 14  }
 0x2aa   :  { %735 = vrot.lane.b32.xlu0 %v5312_v40, %s5145_s27  ;;  %725 = vrot.lane.b32.xlu1 %v5318_v41, %s5143_s25 }
 0x2ae   :  { %741 = vrot.lane.b32.xlu0 %v5312_v40, %s5146_s0  ;;  %731 = vrot.lane.b32.xlu1 %v5318_v41, %s5144_s26 }
 0x2b2   :  { %737 = vrot.lane.b32.xlu1 %v5318_v41, %s5145_s27  ;;  %s5156_s27 = smov [#allocation2]  }
 0x2b6   :  { %743 = vrot.lane.b32.xlu1 %v5318_v41, %s5146_s0  ;;  %s4902_s0 = sshll.u32 %s5156_s27, 4  ;;  %s4903_s0 = int_to_ptr.vmem [resolvable:$true] %s4902_s0 }
 0x2b7   :  { %p5099_p1 = scmp.lt.s32.totalorder %s4903_s0, %s4903_s0 }
 0x2dc   :  { %v5366_v42 = vpop.permute.xlu0 %639  ;;  %v5368_v43 = vpop.permute.xlu1 %633 }
 0x2dd   :  { %6748 = vst [vmem:[#allocation9_spill] sm:$0xff] %v5366_v42  ;;  %v747_v33 = vcombine.low %v5312_v40, %v5366_v42 }
 0x2e0   :  { %v5370_v44 = vpop.permute.xlu0 %645  ;;  %v5372_v45 = vpop.permute.xlu1 %635 }
 0x2e1   :  { %v763_v35 = vcombine.low %v5368_v43, %v5370_v44 }
 0x2e4   :  { %v5374_v46 = vpop.permute.xlu0 %651  ;;  %v5376_v48 = vpop.permute.xlu1 %641 }
 0x2e8   :  { %v5378_v49 = vpop.permute.xlu0 %657  ;;  %v5380_v50 = vpop.permute.xlu1 %647 }
 0x2ec   :  { %v5382_v51 = vpop.permute.xlu0 %663  ;;  %v5384_v52 = vpop.permute.xlu1 %653 }
 0x2ed   :  { %v779_v36 = vcombine.low %v5374_v46, %v5382_v51 }
 0x2f0   :  { %v5386_v53 = vpop.permute.xlu0 %669  ;;  %v5388_v54 = vpop.permute.xlu1 %659 }
 0x2f1   :  { %v795_v29 = vcombine.low %v5378_v49, %v5386_v53 }
 0x2f4   :  { %v5390_v55 = vpop.permute.xlu0 %675  ;;  %v5392_v56 = vpop.permute.xlu1 %665 }
 0x2f5   :  { %v1119_v47 = vcombine.low %v5384_v52, %v5392_v56 }
 0x2f7   :  { %v1127_v42 = vrot.slane %v1119_v47, %v5201_v12 }
 0x2f8   :  { %v5394_v57 = vpop.permute.xlu0 %681  ;;  %v5396_v58 = vpop.permute.xlu1 %671 }
 0x2fc   :  { %v5398_v59 = vpop.permute.xlu0 %687  ;;  %v5400_v61 = vpop.permute.xlu1 %677 }
 0x2fd   :  { %6749 = vst [vmem:[#allocation10_spill] sm:$0xff] %v5400_v61 }
 0x300   :  { %v5402_v62 = vpop.permute.xlu0 %693  ;;  %v5404_v63 = vpop.permute.xlu1 %683 }
 0x301   :  { %6750 = vst [vmem:[#allocation11_spill] sm:$0xff] %v5404_v63 }
 0x304   :  { %v5406_v0 = vpop.permute.xlu0 %699  ;;  %v5408_v2 = vpop.permute.xlu1 %689 }
 0x305   :  { %6751 = vst [vmem:[#allocation12_spill] sm:$0xff] %v5408_v2  ;;  %v1223_v47 = vcombine.low %v5400_v61, %v5408_v2 }
 0x308   :  { %v5410_v3 = vpop.permute.xlu0 %705  ;;  %v5412_v5 = vpop.permute.xlu1 %695 }
 0x30c   :  { %v5414_v6 = vpop.permute.xlu0 %711  ;;  %v5416_v7 = vpop.permute.xlu1 %701 }
 0x30d   :  { %6752 = vst [vmem:[#allocation13_spill] sm:$0xff] %v5416_v7  ;;  %v915_v1 = vcombine.low %v5406_v0, %v5414_v6 }
 0x310   :  { %v5418_v8 = vpop.permute.xlu0 %717  ;;  %v5420_v10 = vpop.permute.xlu1 %707 }
 0x311   :  { %6753 = vst [vmem:[#allocation14_spill] sm:$0xff] %v5420_v10 }
 0x314   :  { %v724_v11 = vpop.permute.xlu0 %723  ;;  %v5422_v13 = vpop.permute.xlu1 %713 }
 0x315   :  { %6754 = vst [vmem:[#allocation15_spill] sm:$0xff] %v5422_v13 }
 0x318   :  { %v730_v14 = vpop.permute.xlu0 %729  ;;  %v5424_v15 = vpop.permute.xlu1 %719 }
 0x31c   :  { %v736_v17 = vpop.permute.xlu0 %735  ;;  %v726_v18 = vpop.permute.xlu1 %725 }
 0x31d   :  { %v1019_v19 = vcombine.low %v724_v11, %v736_v17  ;;  %v1020_v20 = vcombine.high %v724_v11, %v736_v17  ;;  %v5448_v11 = vrot.slane %v795_v29, %v5201_v12 }
 0x31f   :  { %v1027_v26 = vrot.slane %v1019_v19, %v5201_v12  ;;  %v5434_v30 = vrot.slane %v1020_v20, %v5201_v12 }
 0x320   :  { %v742_v21 = vpop.permute.xlu0 %741  ;;  %v732_v22 = vpop.permute.xlu1 %731 }
 0x321   :  { %v1035_v23 = vcombine.low %v730_v14, %v742_v21  ;;  %v1036_v24 = vcombine.high %v730_v14, %v742_v21 }
 0x323   :  { %v1043_v27 = vrot.slane %v1035_v23, %v5201_v12  ;;  %v5429_v28 = vrot.slane %v1036_v24, %v5201_v12  ;;  %v5456_v23 = vrot.slane %v747_v33, %v5201_v12  ;;  %v5462_v24 = vrot.slane %v779_v36, %v5201_v12 }
 0x324   :  { %v738_v32 = vpop.permute.xlu1 %737  ;;  %v1087_v33 = vcombine.low %v5318_v41, %v5376_v48 }
 0x325   :  { %v1051_v34 = vcombine.low %v1027_v26, %v1043_v27  ;;  %v1359_v25 = vcombine.low %v726_v18, %v738_v32  ;;  %v1068_v37 = vcombine.high %v5434_v30, %v5429_v28  ;;  %v1360_v38 = vcombine.high %v726_v18, %v738_v32 }
 0x326   :  { %v5459_v18 = vrot.slane %v763_v35, %v5201_v12  ;;  %v931_v35 = vcombine.low %v5410_v3, %v5418_v8  ;;  %v1052_v36 = vcombine.high %v1027_v26, %v1043_v27 }
 0x327   :  { %v5445_v39 = vrot.slane %v1051_v34, %v5208_v16  ;;  %v5451_v17 = vrot.slane %v1068_v37, %v5208_v16  ;;  %v1367_v29 = vrot.slane %v1359_v25, %v5201_v12  ;;  %v1374_v32 = vrot.slane %v1360_v38, %v5201_v12 }
 0x328   :  { %v744_v14 = vpop.permute.xlu1 %743  ;;  %v843_v25 = vcombine.low %v5462_v24, %v5448_v11  ;;  %v5498_v60 = vrot.slane %v931_v35, %v5201_v12  ;;  %v5514_v35 = vrot.slane %v915_v1, %v5201_v12  ;;  %v1271_v1 = vcombine.low %v5420_v10, %v5424_v15 }
 0x329   :  { %v1375_v19 = vcombine.low %v732_v22, %v744_v14  ;;  %v1376_v20 = vcombine.high %v732_v22, %v744_v14  ;;  %v1435_v21 = vsel %vm1434_vm3, %v5445_v39, -inf  ;;  %v1086_v37 = vcombine.high %v5451_v17, %v6726_v9 }
 0x32a   :  { %1436 = vmax.xlane.f32.xlu1 %v1435_v21 }
 0x32b   :  { %v1383_v34 = vrot.slane %v1375_v19, %v5201_v12  ;;  %v1390_v22 = vrot.slane %v1376_v20, %v5201_v12  ;;  %v1135_v19 = vcombine.low %v5388_v54, %v5396_v58  ;;  %v899_v20 = vcombine.low %v5394_v57, %v5402_v62 }
 0x32c   :  { %v5483_v9 = vsel %vm1434_vm3, %v1086_v37, -inf  ;;  %v811_v37 = vcombine.low %v5456_v23, %v5459_v18 }
 0x32d   :  { %v1392_v14 = vcombine.high %v1367_v29, %v1383_v34  ;;  %v1391_v21 = vcombine.low %v1367_v29, %v1383_v34  ;;  %v1407_v38 = vcombine.low %v1374_v32, %v1390_v22  ;;  %v1408_v31 = vcombine.high %v1374_v32, %v1390_v22  ;;  %6755 = vst [vmem:[#allocation16_spill] sm:$0xff] %v5483_v9 }
 0x32e   :  { %v1103_v34 = vcombine.low %v5372_v45, %v5380_v50  ;;  %v883_v22 = vcombine.low %v5390_v55, %v5398_v59  ;;  %v5521_v40 = vrot.slane %v899_v20, %v5201_v12  ;;  %v819_v10 = vrot.slane %v811_v37, %v5208_v16 }
 0x32f   :  { %v5486_v26 = vrot.slane %v1392_v14, %v5208_v16  ;;  %v5489_v27 = vrot.slane %v1391_v21, %v5208_v16  ;;  %v1415_v29 = vrot.slane %v1407_v38, %v5208_v16  ;;  %v1422_v32 = vrot.slane %v1408_v31, %v5208_v16 }
 0x330   :  { %v5507_v31 = vrot.slane %v1052_v36, %v5208_v16  ;;  %v1067_v38 = vcombine.low %v5434_v30, %v5429_v28  ;;  %v851_v36 = vrot.slane %v843_v25, %v5208_v16  ;;  %v5526_v30 = vrot.slane %v883_v22, %v5201_v12 }
 0x331   :  { %6756 = vst [vmem:[#allocation17_spill] sm:$0xff] %v5486_v26  ;;  %v1525_v14 = vsel %vm1434_vm3, %v5486_v26, -inf  ;;  %v1507_v21 = vsel %vm1434_vm3, %v5489_v27, -inf  ;;  %v1425_v9 = vcombine.high %v1415_v29, %v6757_v4  ;;  %v5518_v26 = vrot.slane %v1135_v19, %v5201_v12 }
 0x332   :  { %1526 = vmax.xlane.f32.xlu0 %v1525_v14  ;;  %1508 = vmax.xlane.f32.xlu1 %v1507_v21  ;;  %v1426_v28 = vcombine.high %v1422_v32, %v6757_v4  ;;  %v979_v14 = vcombine.low %v5514_v35, %v5498_v60  ;;  %v1543_v19 = vsel %vm1434_vm3, %v1415_v29, -inf  ;;  %v1453_v20 = vsel %vm1434_vm3, %v5507_v31, -inf }
 0x333   :  { %v5533_v21 = vsel %vm1434_vm3, %v1425_v9, -inf  ;;  %v5539_v25 = vrot.slane %v1067_v38, %v5208_v16  ;;  %v1111_v9 = vrot.slane %v1103_v34, %v5201_v12  ;;  %v1239_v29 = vcombine.low %v5404_v63, %v5412_v5 }
 0x334   :  { %6758 = vst [vmem:[#allocation18_spill] sm:$0xff] %v5533_v21  ;;  %v5542_v22 = vsel %vm1434_vm3, %v1426_v28, -inf  ;;  %v1255_v21 = vcombine.low %v5416_v7, %v5422_v13  ;;  %v947_v38 = vcombine.low %v5526_v30, %v5521_v40  ;;  %v1095_v28 = vrot.slane %v1087_v33, %v5201_v12 }
 0x335   :  { %6759 = vst [vmem:[#allocation19_spill] sm:$0xff] %v5539_v25  ;;  %6760 = vst [vmem:[#allocation20_spill] sm:$0xff] %v5542_v22  ;;  %v1183_v37 = vcombine.low %v1127_v42, %v5518_v26  ;;  %v1561_v34 = vsel %vm1434_vm3, %v1422_v32, -inf  ;;  %v1471_v22 = vsel %vm1434_vm3, %v5539_v25, -inf  ;;  %v987_v7 = vrot.slane %v979_v14, %v5208_v16 }
 0x336   :  { %1544 = vmax.xlane.f32.xlu0 %v1543_v19  ;;  %1454 = vmax.xlane.f32.xlu1 %v1453_v20  ;;  %v875_v19 = vcombine.low %v819_v10, %v851_v36  ;;  %v5558_v20 = vrot.slane %v1271_v1, %v5201_v12  ;;  %v5565_v33 = vrot.slane %v1239_v29, %v5201_v12  ;;  %v1489_v14 = vsel %vm1434_vm3, %v5451_v17, -inf }
 0x337   :  { %v5568_v61 = vrot.slane %v1255_v21, %v5201_v12  ;;  %v955_v2 = vrot.slane %v947_v38, %v5208_v16  ;;  %v1151_v13 = vcombine.low %v1095_v28, %v1111_v9  ;;  %v876_v63 = vcombine.high %v819_v10, %v851_v36 }
 0x338   :  { %v1428_v1 = vsel %vm1427_vm4, %v875_v19, -inf  ;;  %v1191_v32 = vrot.slane %v1183_v37, %v5208_v16  ;;  %v5574_v25 = vrot.slane %v1223_v47, %v5201_v12  ;;  %v844_v36 = vcombine.high %v5462_v24, %v5448_v11 }
 0x339   :  { %v1319_v29 = vcombine.low %v5568_v61, %v5558_v20  ;;  %v1159_v21 = vrot.slane %v1151_v13, %v5208_v16  ;;  %v1438_v10 = vsel %vm1427_vm4, %v876_v63, -inf  ;;  %v1012_v19 = vcombine.high %v955_v2, %v987_v7 }
 0x33a   :  { %1562 = vmax.xlane.f32.xlu0 %v1561_v34  ;;  %1472 = vmax.xlane.f32.xlu1 %v1471_v22  ;;  %v1011_v22 = vcombine.low %v955_v2, %v987_v7  ;;  %v1287_v38 = vcombine.low %v5574_v25, %v5565_v33  ;;  %v812_v34 = vcombine.high %v5456_v23, %v5459_v18 }
 0x33b   :  { %v1215_v17 = vcombine.low %v1159_v21, %v1191_v32  ;;  %v1327_v37 = vrot.slane %v1319_v29, %v5208_v16  ;;  %v1184_v63 = vcombine.high %v1127_v42, %v5518_v26  ;;  %v1441_v11 = vsel %vm1427_vm4, %v1012_v19, -inf }
 0x33c   :  { %v1431_v47 = vsel %vm1427_vm4, %v1011_v22, -inf  ;;  %v1295_v13 = vrot.slane %v1287_v38, %v5208_v16  ;;  %v1216_v7 = vcombine.high %v1159_v21, %v1191_v32  ;;  %v1152_v22 = vcombine.high %v1095_v28, %v1111_v9 }
 0x33d   :  { %v1501_v24 = vsel %vm1427_vm4, %v1215_v17, -inf  ;;  %v1198_v18 = vrot.slane %v1184_v63, %v5208_v16  ;;  %v980_v38 = vcombine.high %v5514_v35, %v5498_v60  ;;  %v948_v9 = vcombine.high %v5526_v30, %v5521_v40 }
 0x33e   :  { %1429 = vmax.xlane.f32.xlu0 %v1428_v1  ;;  %1490 = vmax.xlane.f32.xlu1 %v1489_v14  ;;  %v5592_v1 = vrot.slane %v844_v36, %v5208_v16  ;;  %v1351_v2 = vcombine.low %v1295_v13, %v1327_v37  ;;  %v5598_v14 = vrot.slane %v812_v34, %v5208_v16  ;;  %v1510_v42 = vsel %vm1427_vm4, %v1216_v7, -inf  ;;  %v6762_v34 = vld [vmem:[#allocation8_spill] sm:$0xff] }
 0x33f   :  { %v1352_v26 = vcombine.high %v1295_v13, %v1327_v37  ;;  %v1166_v32 = vrot.slane %v1152_v22, %v5208_v16  ;;  %v932_v28 = vcombine.high %v5410_v3, %v5418_v8  ;;  %v994_v60 = vrot.slane %v980_v38, %v5208_v16  ;;  %v6761_v37 = vld [vmem:[#allocation9_spill] sm:$0xff] }
 0x340   :  { %v877_v23 = vcombine.low %v5598_v14, %v5592_v1  ;;  %v1504_v29 = vsel %vm1427_vm4, %v1351_v2, -inf  ;;  %v916_v35 = vcombine.high %v5406_v0, %v5414_v6  ;;  %v764_v40 = vcombine.high %v5368_v43, %v5370_v44 }
 0x341   :  { %v1217_v21 = vcombine.low %v1166_v32, %v1198_v18  ;;  %v900_v3 = vcombine.high %v5394_v57, %v5402_v62  ;;  %v962_v8 = vrot.slane %v948_v9, %v5208_v16  ;;  %v1136_v30 = vcombine.high %v5388_v54, %v5396_v58 }
 0x342   :  { %1439 = vmax.xlane.f32.xlu0 %v1438_v10  ;;  %1432 = vmax.xlane.f32.xlu1 %v1431_v47  ;;  %v1513_v10 = vsel %vm1427_vm4, %v1352_v26, -inf  ;;  %v1447_v36 = vsel %vm1427_vm4, %v877_v23, -inf  ;;  %v1083_v47 = vcombine.high %v5445_v39, %v6757_v4  ;;  %v884_v39 = vcombine.high %v5390_v55, %v5398_v59 }
 0x343   :  { %v5629_v19 = vrot.slane %v932_v28, %v5201_v12  ;;  %v1519_v0 = vsel %vm1427_vm4, %v1217_v21, -inf  ;;  %v1013_v17 = vcombine.low %v962_v8, %v994_v60  ;;  %v1014_v43 = vcombine.high %v962_v8, %v994_v60  ;;  %v6763_v28 = vld [vmem:[#allocation14_spill] sm:$0xff] }
 0x344   :  { %v1444_v6 = vsel %vm1434_vm3, %v1083_v47, -inf  ;;  %v1320_v44 = vcombine.high %v5568_v61, %v5558_v20  ;;  %v1104_v57 = vcombine.high %v5372_v45, %v5380_v50  ;;  %v1120_v54 = vcombine.high %v5384_v52, %v5392_v56 }
 0x345   :  { %v5640_v55 = vrot.slane %v916_v35, %v5201_v12  ;;  %v1088_v58 = vcombine.high %v5318_v41, %v5376_v48  ;;  %v796_v59 = vcombine.high %v5378_v49, %v5386_v53  ;;  %v5647_v62 = vrot.slane %v900_v3, %v5201_v12  ;;  %v6766_v3 = vld [vmem:[#allocation13_spill] sm:$0xff] }
 0x346   :  { %1442 = vmax.xlane.f32.xlu0 %v1441_v11  ;;  %1502 = vmax.xlane.f32.xlu1 %v1501_v24  ;;  %v1288_v45 = vcombine.high %v5574_v25, %v5565_v33  ;;  %v5652_v50 = vrot.slane %v1136_v30, %v5201_v12  ;;  %v5655_v52 = vrot.slane %v884_v39, %v5201_v12  ;;  %v1450_v41 = vsel %vm1427_vm4, %v1013_v17, -inf }
 0x347   :  { %v1218_v56 = vcombine.high %v1166_v32, %v1198_v18  ;;  %v995_v61 = vcombine.low %v5640_v55, %v5629_v19  ;;  %v1459_v48 = vsel %vm1427_vm4, %v1014_v43, -inf  ;;  %v1423_v49 = vcombine.high %v5489_v27, %v6757_v4 }
 0x348   :  { %v1334_v53 = vrot.slane %v1320_v44, %v5208_v16  ;;  %v5665_v25 = vrot.slane %v1104_v57, %v5201_v12  ;;  %v780_v20 = vcombine.high %v5374_v46, %v5382_v51  ;;  %v5670_v33 = vrot.slane %v1120_v54, %v5201_v12 }
 0x349   :  { %v748_v13 = vcombine.high %v6762_v34, %v6761_v37  ;;  %v1302_v63 = vrot.slane %v1288_v45, %v5208_v16  ;;  %v963_v27 = vcombine.low %v5655_v52, %v5647_v62  ;;  %v5678_v11 = vrot.slane %v1088_v58, %v5201_v12  ;;  %v6769_v34 = vld [vmem:[#allocation17_spill] sm:$0xff] }
 0x34a   :  { %1505 = vmax.xlane.f32.xlu0 %v1504_v29  ;;  %1511 = vmax.xlane.f32.xlu1 %v1510_v42  ;;  %v5681_v24 = vrot.slane %v796_v59, %v5201_v12  ;;  %v1528_v46 = vsel %vm1427_vm4, %v1218_v56, -inf  ;;  %v1199_v51 = vcombine.low %v5670_v33, %v5652_v50  ;;  %v1516_v2 = vsel %vm1434_vm3, %v1423_v49, -inf }
 0x34b   :  { %v1084_v7 = vcombine.high %v5507_v31, %v6757_v4  ;;  %v1353_v22 = vcombine.low %v1302_v63, %v1334_v53  ;;  %v1003_v23 = vrot.slane %v995_v61, %v5208_v16  ;;  %v5691_v18 = vrot.slane %v764_v40, %v5201_v12  ;;  %v6765_v40 = vld [vmem:[#allocation15_spill] sm:$0xff] }
 0x34c   :  { %v5694_v29 = vrot.slane %v780_v20, %v5201_v12  ;;  %v1167_v42 = vcombine.low %v5678_v11, %v5665_v25  ;;  %v971_v26 = vrot.slane %v963_v27, %v5208_v16  ;;  %v5700_v38 = vrot.slane %v748_v13, %v5201_v12 }
 0x34d   :  { %v878_v31 = vcombine.high %v5598_v14, %v5592_v1  ;;  %v1207_v32 = vrot.slane %v1199_v51, %v5208_v16  ;;  %v1272_v21 = vcombine.high %v6763_v28, %v5424_v15  ;;  %v6764_v14 = vld [vmem:[#allocation11_spill] sm:$0xff]  ;;  %v1256_v8 = vcombine.high %v6766_v3, %v6765_v40 }
 0x34e   :  { %1514 = vmax.xlane.f32.xlu0 %v1513_v10  ;;  %1448 = vmax.xlane.f32.xlu1 %v1447_v36  ;;  %v859_v9 = vcombine.low %v5694_v29, %v5681_v24  ;;  %v1462_v10 = vsel %vm1434_vm3, %v1084_v7, -inf  ;;  %v1522_v36 = vsel %vm1427_vm4, %v1353_v22, -inf  ;;  %v1015_v47 = vcombine.low %v971_v26, %v1003_v23 }
 0x34f   :  { %v1175_v60 = vrot.slane %v1167_v42, %v5208_v16  ;;  %v827_v1 = vcombine.low %v5700_v38, %v5691_v18  ;;  %v1240_v35 = vcombine.high %v6764_v14, %v5412_v5  ;;  %v1456_v15 = vsel %vm1427_vm4, %v878_v31, -inf }
 0x350   :  { %v867_v39 = vrot.slane %v859_v9, %v5208_v16  ;;  %v5723_v43 = vrot.slane %v1272_v21, %v5201_v12  ;;  %v1468_v44 = vsel %vm1427_vm4, %v1015_v47, -inf  ;;  %v1354_v57 = vcombine.high %v1302_v63, %v1334_v53 }
 0x351   :  { %v1219_v30 = vcombine.low %v1175_v60, %v1207_v32  ;;  %v835_v5 = vrot.slane %v827_v1, %v5208_v16  ;;  %v5728_v54 = vrot.slane %v1240_v35, %v5201_v12  ;;  %v1270_v58 = vrot.slane %v1256_v8, %v5201_v12 }
 0x352   :  { %1445 = vmax.xlane.f32.xlu0 %v1444_v6  ;;  %1520 = vmax.xlane.f32.xlu1 %v1519_v0  ;;  %v6767_v0 = vld [vmem:[#allocation12_spill] sm:$0xff]  ;;  %v6768_v6 = vld [vmem:[#allocation10_spill] sm:$0xff]  ;;  %v1531_v61 = vsel %vm1427_vm4, %v1354_v57, -inf  ;;  %v1220_v20 = vcombine.high %v1175_v60, %v1207_v32  ;;  %v1424_v13 = vcombine.high %v6769_v34, %v6757_v4  ;;  %v996_v27 = vcombine.high %v5640_v55, %v5629_v19 }
 0x353   :  { %v1224_v17 = vcombine.high %v6768_v6, %v6767_v0  ;;  %v1537_v59 = vsel %vm1427_vm4, %v1219_v30, -inf  ;;  %v879_v45 = vcombine.low %v835_v5, %v867_v39  ;;  %v964_v51 = vcombine.high %v5655_v52, %v5647_v62  ;;  %v6771_v0 = vld [vmem:[#allocation18_spill] sm:$0xff] }
 0x354   :  { %v1200_v7 = vcombine.high %v5670_v33, %v5652_v50  ;;  %v1534_v22 = vsel %vm1434_vm3, %v1424_v13, -inf  ;;  %v1010_v19 = vrot.slane %v996_v27, %v5208_v16  ;;  %v1168_v62 = vcombine.high %v5678_v11, %v5665_v25  ;;  %v6775_v27 = vld [vmem:[#allocation5_spill] sm:$0xff] }
 0x355   :  { %v1238_v56 = vrot.slane %v1224_v17, %v5201_v12  ;;  %v1465_v53 = vsel %vm1427_vm4, %v879_v45, -inf  ;;  %v978_v55 = vrot.slane %v964_v51, %v5208_v16  ;;  %v880_v52 = vcombine.high %v835_v5, %v867_v39 }
 0x356   :  { %1451 = vmax.xlane.f32.xlu0 %v1450_v41  ;;  %1460 = vmax.xlane.f32.xlu1 %v1459_v48  ;;  %v1016_v41 = vcombine.high %v971_v26, %v1003_v23  ;;  %v1335_v48 = vcombine.low %v1270_v58, %v5723_v43  ;;  %v6770_v23 = vld [vmem:[#allocation19_spill] sm:$0xff]  ;;  %v860_v31 = vcombine.high %v5694_v29, %v5681_v24 }
 0x357   :  { %v1303_v49 = vcombine.low %v1238_v56, %v5728_v54  ;;  %v1085_v42 = vcombine.high %v6770_v23, %v6757_v4  ;;  %v1017_v32 = vcombine.low %v978_v55, %v1010_v19  ;;  %v1214_v9 = vrot.slane %v1200_v7, %v5208_v16 }
 0x358   :  { %v1477_v37 = vsel %vm1427_vm4, %v1016_v41, -inf  ;;  %v1343_v63 = vrot.slane %v1335_v48, %v5208_v16  ;;  %v828_v28 = vcombine.high %v5700_v38, %v5691_v18  ;;  %v1182_v21 = vrot.slane %v1168_v62, %v5208_v16 }
 0x359   :  { %v1480_v50 = vsel %vm1434_vm3, %v1085_v42, -inf  ;;  %v874_v25 = vrot.slane %v860_v31, %v5208_v16  ;;  %v1486_v11 = vsel %vm1427_vm4, %v1017_v32, -inf  ;;  %v1474_v24 = vsel %vm1427_vm4, %v880_v52, -inf }
 0x35a   :  { %1529 = vmax.xlane.f32.xlu1 %v1528_v46  ;;  %1517 = vmax.xlane.f32.xlu0 %v1516_v2  ;;  %v1311_v46 = vrot.slane %v1303_v49, %v5208_v16  ;;  %v1546_v2 = vsel %vm1427_vm4, %v1220_v20, -inf  ;;  %v1221_v29 = vcombine.low %v1182_v21, %v1214_v9  ;;  %v1018_v18 = vcombine.high %v978_v55, %v1010_v19 }
 0x35b   :  { %v1336_v38 = vcombine.high %v1270_v58, %v5723_v43  ;;  %v1304_v14 = vcombine.high %v1238_v56, %v5728_v54  ;;  %v1222_v3 = vcombine.high %v1182_v21, %v1214_v9  ;;  %v6772_v43 = vld [vmem:[#allocation16_spill] sm:$0xff]  ;;  %v6774_v41 = vlaneseq }
 0x35c   :  { %v1355_v26 = vcombine.low %v1311_v46, %v1343_v63  ;;  %v1555_v60 = vsel %vm1427_vm4, %v1221_v29, -inf  ;;  %v1495_v35 = vsel %vm1427_vm4, %v1018_v18, -inf  ;;  %v6773_v54 = vld [vmem:[#allocation20_spill] sm:$0xff]  ;;  %vm1863_vm3 = vcmask 1047559  }
 0x35d   :  { %v1350_v8 = vrot.slane %v1336_v38, %v5208_v16  ;;  %v1564_v30 = vsel %vm1427_vm4, %v1222_v3, -inf  ;;  %v1622_v48 = vand.u32 127, %v6774_v41 }
 0x35e   :  { %1463 = vmax.xlane.f32.xlu1 %v1462_v10  ;;  %1523 = vmax.xlane.f32.xlu0 %v1522_v36  ;;  %v1540_v33 = vsel %vm1427_vm4, %v1355_v26, -inf  ;;  %v1356_v10 = vcombine.high %v1311_v46, %v1343_v63  ;;  %v842_v36 = vrot.slane %v828_v28, %v5208_v16 }
 0x35f   :  { %v1627_v20 = vadd.s32 4294967288, %v1622_v48  ;;  %v1879_v34 = vadd.s32 4294967289, %v1622_v48  ;;  %v5803_v46 = vsub.s32 %v1622_v48, %v6775_v27  ;;  %v2119_v23 = vadd.s32 2, %v1622_v48 }
 0x360   :  { %v881_v47 = vcombine.low %v842_v36, %v874_v25  ;;  %v1549_v1 = vsel %vm1427_vm4, %v1356_v10, -inf  ;;  %v882_v17 = vcombine.high %v842_v36, %v874_v25  ;;  %v2124_v26 = vadd.s32 4294967290, %v1622_v48 }
 0x361   :  { %v5806_v51 = vsub.s32 %v1627_v20, %v6775_v27  ;;  %v5812_v7 = vsub.s32 %v1879_v34, %v6775_v27  ;;  %v1886_v52 = vadd.s32 4294967281, %v1622_v48  ;;  %v2131_v31 = vadd.s32 4294967282, %v1622_v48 }
 0x362   :  { %1469 = vmax.xlane.f32.xlu1 %v1468_v44  ;;  %1457 = vmax.xlane.f32.xlu0 %v1456_v15  ;;  %v1483_v40 = vsel %vm1427_vm4, %v881_v47, -inf  ;;  %v1318_v15 = vrot.slane %v1304_v14, %v5208_v16  ;;  %v1492_v44 = vsel %vm1427_vm4, %v882_v17, -inf  ;;  %v5825_v28 = vsub.s32 %v2119_v23, %v6775_v27 }
 0x363   :  { %v5828_v21 = vsub.s32 %v2124_v26, %v6775_v27 }
 0x364   :  { %v1357_v39 = vcombine.low %v1318_v15, %v1350_v8  ;;  %v1358_v57 = vcombine.high %v1318_v15, %v1350_v8 }
 0x366   :  { %1538 = vmax.xlane.f32.xlu1 %v1537_v59  ;;  %1532 = vmax.xlane.f32.xlu0 %v1531_v61  ;;  %v1558_v6 = vsel %vm1427_vm4, %v1357_v39, -inf  ;;  %v1567_v5 = vsel %vm1427_vm4, %v1358_v57, -inf  ;;  %vm2728_vm4 = vcmask 146432  }
 0x36a   :  { %1478 = vmax.xlane.f32.xlu1 %v1477_v37  ;;  %1466 = vmax.xlane.f32.xlu0 %v1465_v53  ;;  %v1874_v37 = vadd.s32 1, %v1622_v48 }
 0x36e   :  { %1547 = vmax.xlane.f32.xlu1 %v1546_v2  ;;  %1535 = vmax.xlane.f32.xlu0 %v1534_v22  ;;  %v5809_v2 = vsub.s32 %v1874_v37, %v6775_v27  ;;  %v1634_v22 = vadd.s32 4294967280, %v1622_v48 }
 0x370   :  { %v5822_v9 = vsub.s32 %v1634_v22, %v6775_v27 }
 0x372   :  { %1481 = vmax.xlane.f32.xlu1 %v1480_v50  ;;  %1541 = vmax.xlane.f32.xlu0 %v1540_v33 }
 0x376   :  { %1487 = vmax.xlane.f32.xlu1 %v1486_v11  ;;  %1475 = vmax.xlane.f32.xlu0 %v1474_v24 }
 0x37a   :  { %1556 = vmax.xlane.f32.xlu1 %v1555_v60  ;;  %1550 = vmax.xlane.f32.xlu0 %v1549_v1  ;;  %v5836_v60 = vsub.s32 %v1886_v52, %v6775_v27  ;;  %v5839_v1 = vsub.s32 %v2131_v31, %v6775_v27 }
 0x37e   :  { %1496 = vmax.xlane.f32.xlu1 %v1495_v35  ;;  %1484 = vmax.xlane.f32.xlu0 %v1483_v40 }
 0x382   :  { %1565 = vmax.xlane.f32.xlu1 %v1564_v30  ;;  %1553 = vmax.xlane.f32.xlu0 %v6771_v0 }
 0x386   :  { %1499 = vmax.xlane.f32.xlu1 %v6772_v43  ;;  %1559 = vmax.xlane.f32.xlu0 %v1558_v6 }
 0x38a   :  { %1493 = vmax.xlane.f32.xlu0 %v1492_v44 }
 0x38e   :  { %1568 = vmax.xlane.f32.xlu0 %v1567_v5 }
 0x392   :  { %1571 = vmax.xlane.f32.xlu0 %v6773_v54 }
 0x3b7   :  { %v5783_v58 = vpop.xlane.xlu1 %1436 }
 0x3b8   :  { %v1890_v26 = vrot.slane %v5783_v58, %v5836_v60 }
 0x3bf   :  { %v5785_v59 = vpop.xlane.xlu0 %1526  ;;  %v5787_v45 = vpop.xlane.xlu1 %1508 }
 0x3c0   :  { %v1751_v43 = vrot.slane %v5787_v45, %v5822_v9  ;;  %v2003_v44 = vrot.slane %v5787_v45, %v5836_v60  ;;  %v2248_v57 = vrot.slane %v5787_v45, %v5839_v1 }
 0x3c3   :  { %v5789_v56 = vpop.xlane.xlu0 %1544  ;;  %v5791_v61 = vpop.xlane.xlu1 %1454 }
 0x3c7   :  { %v5794_v49 = vpop.xlane.xlu0 %1562  ;;  %v5796_v53 = vpop.xlane.xlu1 %1472 }
 0x3cb   :  { %v5798_v13 = vpop.xlane.xlu0 %1429  ;;  %v5800_v63 = vpop.xlane.xlu1 %1490 }
 0x3cc   :  { %v1626_v55 = vrot.slane %v5798_v13, %v5803_v46  ;;  %v1878_v50 = vrot.slane %v5798_v13, %v5809_v2  ;;  %v2123_v45 = vrot.slane %v5798_v13, %v5825_v28 }
 0x3cf   :  { %v1440_v42 = vpop.xlane.xlu0 %1439  ;;  %v1433_v19 = vpop.xlane.xlu1 %1432 }
 0x3d0   :  { %v1631_v62 = vrot.slane %v1433_v19, %v5806_v51  ;;  %v1883_v33 = vrot.slane %v1433_v19, %v5812_v7  ;;  %v1644_v29 = vrot.slane %v1440_v42, %v5803_v46  ;;  %v1896_v10 = vrot.slane %v1440_v42, %v5809_v2 }
 0x3d1   :  { %v2141_v18 = vrot.slane %v1440_v42, %v5825_v28  ;;  %v2128_v5 = vrot.slane %v1433_v19, %v5828_v21  ;;  %v1638_v42 = vrot.slane %v5783_v58, %v5822_v9  ;;  %v2135_v19 = vrot.slane %v5783_v58, %v5839_v1 }
 0x3d2   :  { %v1633_v32 = vsel %vm1632_vm5, %v1631_v62, %v1626_v55  ;;  %v1885_v25 = vsel %vm1884_vm6, %v1883_v33, %v1878_v50  ;;  %v1667_v50 = vrot.slane %v5791_v61, %v5822_v9 }
 0x3d3   :  { %v1443_v11 = vpop.xlane.xlu0 %1442  ;;  %v1503_v24 = vpop.xlane.xlu1 %1502  ;;  %v2130_v23 = vsel %vm2129_vm8, %v2128_v5, %v2123_v45  ;;  %v1640_v33 = vsel %vm1639_vm7, %v1638_v42, %v1633_v32 }
 0x3d4   :  { %v1648_v36 = vrot.slane %v1443_v11, %v5806_v51  ;;  %v1900_v47 = vrot.slane %v1443_v11, %v5812_v7  ;;  %v2145_v38 = vrot.slane %v1443_v11, %v5828_v21  ;;  %v1742_v3 = vrot.slane %v1503_v24, %v5803_v46 }
 0x3d5   :  { %v1994_v8 = vrot.slane %v1503_v24, %v5809_v2  ;;  %v2239_v39 = vrot.slane %v1503_v24, %v5825_v28  ;;  %v1892_v11 = vsel %vm1891_vm9, %v1890_v26, %v1885_v25  ;;  %v2137_v58 = vsel %vm2136_vm10, %v2135_v19, %v2130_v23 }
 0x3d6   :  { %v1649_v14 = vsel %vm1632_vm5, %v1648_v36, %v1644_v29  ;;  %v1901_v35 = vsel %vm1884_vm6, %v1900_v47, %v1896_v10  ;;  %v2146_v40 = vsel %vm2129_vm8, %v2145_v38, %v2141_v18 }
 0x3d7   :  { %v1506_v15 = vpop.xlane.xlu0 %1505  ;;  %v5848_v30 = vpop.xlane.xlu1 %1511 }
 0x3d8   :  { %v1746_v0 = vrot.slane %v1506_v15, %v5806_v51  ;;  %v1998_v6 = vrot.slane %v1506_v15, %v5812_v7  ;;  %v2243_v17 = vrot.slane %v1506_v15, %v5828_v21  ;;  %v2008_v5 = vrot.slane %v5848_v30, %v5809_v2 }
 0x3da   :  { %v1747_v54 = vsel %vm1632_vm5, %v1746_v0, %v1742_v3  ;;  %v1999_v41 = vsel %vm1884_vm6, %v1998_v6, %v1994_v8  ;;  %v2244_v48 = vsel %vm2129_vm8, %v2243_v17, %v2239_v39  ;;  %v2164_v39 = vrot.slane %v5791_v61, %v5839_v1 }
 0x3db   :  { %v1752_v20 = vsel %vm1639_vm7, %v1751_v43, %v1747_v54  ;;  %v2004_v37 = vsel %vm1891_vm9, %v2003_v44, %v1999_v41  ;;  %v5867_v34 = vsel %vm2136_vm10, %v2248_v57, %v2244_v48  ;;  %v5869_v27 = vpop.xlane.xlu0 %1514  ;;  %v1449_v22 = vpop.xlane.xlu1 %1448  ;;  %v1756_v0 = vrot.slane %v5848_v30, %v5803_v46 }
 0x3dc   :  { %v1658_v24 = vrot.slane %v1449_v22, %v5803_v46  ;;  %v1910_v47 = vrot.slane %v1449_v22, %v5809_v2  ;;  %v2155_v8 = vrot.slane %v1449_v22, %v5825_v28  ;;  %v1760_v6 = vrot.slane %v5869_v27, %v5806_v51 }
 0x3dd   :  { %v2012_v17 = vrot.slane %v5869_v27, %v5812_v7 }
 0x3de   :  { %v1761_v19 = vsel %vm1632_vm5, %v1760_v6, %v1756_v0 }
 0x3df   :  { %v1446_v55 = vpop.xlane.xlu0 %1445  ;;  %v5880_v62 = vpop.xlane.xlu1 %1520 }
 0x3e0   :  { %v1653_v52 = vrot.slane %v1446_v55, %v5822_v9  ;;  %v1905_v31 = vrot.slane %v1446_v55, %v5836_v60  ;;  %v2150_v13 = vrot.slane %v1446_v55, %v5839_v1 }
 0x3e2   :  { %v1654_v29 = vsel %vm1639_vm7, %v1653_v52, %v1649_v14  ;;  %v1906_v10 = vsel %vm1891_vm9, %v1905_v31, %v1901_v35  ;;  %v2151_v36 = vsel %vm2136_vm10, %v2150_v13, %v2146_v40  ;;  %v1919_v40 = vrot.slane %v5791_v61, %v5836_v60 }
 0x3e3   :  { %v1852_v18 = vsel %vm1851_vm11, %v1654_v29, %v1640_v33  ;;  %v2103_v38 = vsel %vm1851_vm11, %v1906_v10, %v1892_v11  ;;  %v2348_v32 = vsel %vm1851_vm11, %v2151_v36, %v2137_v58  ;;  %v1452_v3 = vpop.xlane.xlu0 %1451  ;;  %v5898_v25 = vpop.xlane.xlu1 %1460  ;;  %v2013_v52 = vsel %vm1884_vm6, %v2012_v17, %v2008_v5 }
 0x3e4   :  { %v1662_v15 = vrot.slane %v1452_v3, %v5806_v51  ;;  %v1914_v14 = vrot.slane %v1452_v3, %v5812_v7  ;;  %v2159_v35 = vrot.slane %v1452_v3, %v5828_v21  ;;  %v2257_v58 = vrot.slane %v5869_v27, %v5828_v21 }
 0x3e5   :  { %v1779_v29 = vrot.slane %v5785_v59, %v5822_v9  ;;  %v2031_v10 = vrot.slane %v5785_v59, %v5836_v60  ;;  %v1807_v36 = vrot.slane %v5789_v56, %v5822_v9  ;;  %v2304_v27 = vrot.slane %v5789_v56, %v5839_v1 }
 0x3e6   :  { %v1663_v43 = vsel %vm1632_vm5, %v1662_v15, %v1658_v24  ;;  %v1915_v44 = vsel %vm1884_vm6, %v1914_v14, %v1910_v47  ;;  %v2160_v57 = vsel %vm2129_vm8, %v2159_v35, %v2155_v8  ;;  %v2253_v47 = vrot.slane %v5848_v30, %v5825_v28 }
 0x3e7   :  { %v1668_v61 = vsel %vm1639_vm7, %v1667_v50, %v1663_v43  ;;  %v1920_v54 = vsel %vm1891_vm9, %v1919_v40, %v1915_v44  ;;  %v2165_v41 = vsel %vm2136_vm10, %v2164_v39, %v2160_v57  ;;  %v1518_v48 = vpop.xlane.xlu0 %1517  ;;  %v5922_v22 = vpop.xlane.xlu1 %1529  ;;  %v2192_v3 = vrot.slane %v5796_v53, %v5839_v1 }
 0x3e8   :  { %v5925_v45 = vsel %vm1853_vm12, %v1668_v61, %v1852_v18  ;;  %v5928_v23 = vsel %vm1853_vm12, %v1920_v54, %v2103_v38  ;;  %v5931_v42 = vsel %vm1853_vm12, %v2165_v41, %v2348_v32  ;;  %v1765_v26 = vrot.slane %v1518_v48, %v5822_v9 }
 0x3e9   :  { %v2017_v55 = vrot.slane %v1518_v48, %v5836_v60  ;;  %v1695_v18 = vrot.slane %v5796_v53, %v5822_v9  ;;  %v1947_v38 = vrot.slane %v5796_v53, %v5836_v60  ;;  %v2258_v30 = vsel %vm2129_vm8, %v2257_v58, %v2253_v47 }
 0x3ea   :  { %v1766_v31 = vsel %vm1639_vm7, %v1765_v26, %v1761_v19  ;;  %v1770_v14 = vrot.slane %v5880_v62, %v5803_v46  ;;  %v1676_v35 = vrot.slane %v5898_v25, %v5806_v51  ;;  %v2262_v40 = vrot.slane %v1518_v48, %v5839_v1 }
 0x3eb   :  { %v5939_v13 = vsel %vm1851_vm11, %v1766_v31, %v1752_v20  ;;  %v2018_v50 = vsel %vm1891_vm9, %v2017_v55, %v2013_v52  ;;  %v1524_v33 = vpop.xlane.xlu0 %1523  ;;  %v1464_v11 = vpop.xlane.xlu1 %1463  ;;  %v2276_v20 = vrot.slane %v5785_v59, %v5839_v1  ;;  %v1928_v53 = vrot.slane %v5898_v25, %v5812_v7 }
 0x3ec   :  { %v5945_v24 = vsel %vm1851_vm11, %v2018_v50, %v2004_v37  ;;  %v2059_v37 = vrot.slane %v5789_v56, %v5836_v60  ;;  %v1774_v0 = vrot.slane %v1524_v33, %v5806_v51  ;;  %v2026_v6 = vrot.slane %v1524_v33, %v5812_v7 }
 0x3ed   :  { %v2271_v17 = vrot.slane %v1524_v33, %v5828_v21  ;;  %v2022_v43 = vrot.slane %v5880_v62, %v5809_v2  ;;  %v2267_v44 = vrot.slane %v5880_v62, %v5825_v28  ;;  %v2173_v57 = vrot.slane %v5898_v25, %v5828_v21 }
 0x3ee   :  { %v1784_v41 = vrot.slane %v5922_v22, %v5803_v46  ;;  %v2036_v48 = vrot.slane %v5922_v22, %v5809_v2  ;;  %v1681_v26 = vrot.slane %v1464_v11, %v5822_v9  ;;  %v2263_v62 = vsel %vm2136_vm10, %v2262_v40, %v2258_v30 }
 0x3ef   :  { %v1458_v59 = vpop.xlane.xlu0 %1457  ;;  %v1470_v32 = vpop.xlane.xlu1 %1469  ;;  %v1933_v25 = vrot.slane %v1464_v11, %v5836_v60  ;;  %v2178_v55 = vrot.slane %v1464_v11, %v5839_v1  ;;  %v1775_v31 = vsel %vm1632_vm5, %v1774_v0, %v1770_v14  ;;  %v2027_v50 = vsel %vm1884_vm6, %v2026_v6, %v2022_v43 }
 0x3f0   :  { %v1672_v8 = vrot.slane %v1458_v59, %v5803_v46  ;;  %v1924_v15 = vrot.slane %v1458_v59, %v5809_v2  ;;  %v2169_v39 = vrot.slane %v1458_v59, %v5825_v28  ;;  %v2272_v33 = vsel %vm2129_vm8, %v2271_v17, %v2267_v44 }
 0x3f1   :  { %v1690_v59 = vrot.slane %v1470_v32, %v5806_v51  ;;  %v1942_v30 = vrot.slane %v1470_v32, %v5812_v7  ;;  %v2032_v0 = vsel %vm1891_vm9, %v2031_v10, %v2027_v50  ;;  %v2277_v6 = vsel %vm2136_vm10, %v2276_v20, %v2272_v33 }
 0x3f2   :  { %v1677_v5 = vsel %vm1632_vm5, %v1676_v35, %v1672_v8  ;;  %v1929_v19 = vsel %vm1884_vm6, %v1928_v53, %v1924_v15  ;;  %v2174_v52 = vsel %vm2129_vm8, %v2173_v57, %v2169_v39  ;;  %v2187_v8 = vrot.slane %v1470_v32, %v5828_v21 }
 0x3f3   :  { %v5988_v61 = vpop.xlane.xlu0 %1532  ;;  %v5990_v54 = vpop.xlane.xlu1 %1538  ;;  %v1682_v58 = vsel %vm1639_vm7, %v1681_v26, %v1677_v5  ;;  %v1934_v47 = vsel %vm1891_vm9, %v1933_v25, %v1929_v19  ;;  %v2179_v35 = vsel %vm2136_vm10, %v2178_v55, %v2174_v52  ;;  %v1780_v53 = vsel %vm1639_vm7, %v1779_v29, %v1775_v31 }
 0x3f4   :  { %v1856_v32 = vsel %vm1855_vm13, %v1682_v58, %v5925_v45  ;;  %v2105_v17 = vsel %vm1855_vm13, %v1934_v47, %v5928_v23  ;;  %v2350_v5 = vsel %vm1855_vm13, %v2179_v35, %v5931_v42  ;;  %v1788_v23 = vrot.slane %v5988_v61, %v5806_v51 }
 0x3f5   :  { %v2355_v52 = vsel %vm1851_vm11, %v2263_v62, %v5867_v34  ;;  %v1866_v31 = vsel %vm1853_vm12, %v1780_v53, %v5939_v13  ;;  %v2111_v33 = vsel %vm1853_vm12, %v2032_v0, %v5945_v24  ;;  %v2050_v58 = vrot.slane %v5990_v54, %v5809_v2 }
 0x3f6   :  { %v2356_v47 = vsel %vm1853_vm12, %v2277_v6, %v2355_v52  ;;  %v1789_v62 = vsel %vm1632_vm5, %v1788_v23, %v1784_v41  ;;  %v2295_v13 = vrot.slane %v5990_v54, %v5825_v28  ;;  %v2087_v52 = vrot.slane %v5794_v49, %v5836_v60 }
 0x3f7   :  { %v1467_v15 = vpop.xlane.xlu0 %1466  ;;  %v6010_v11 = vpop.xlane.xlu1 %1478 }
 0x3f8   :  { %v1686_v14 = vrot.slane %v1467_v15, %v5803_v46  ;;  %v1938_v40 = vrot.slane %v1467_v15, %v5809_v2  ;;  %v2183_v39 = vrot.slane %v1467_v15, %v5825_v28 }
 0x3fa   :  { %v1691_v43 = vsel %vm1632_vm5, %v1690_v59, %v1686_v14  ;;  %v1943_v44 = vsel %vm1884_vm6, %v1942_v30, %v1938_v40  ;;  %v2188_v57 = vsel %vm2129_vm8, %v2187_v8, %v2183_v39  ;;  %v1704_v40 = vrot.slane %v6010_v11, %v5806_v51 }
 0x3fb   :  { %v1696_v29 = vsel %vm1639_vm7, %v1695_v18, %v1691_v43  ;;  %v1948_v10 = vsel %vm1891_vm9, %v1947_v38, %v1943_v44  ;;  %v2193_v20 = vsel %vm2136_vm10, %v2192_v3, %v2188_v57  ;;  %v1536_v26 = vpop.xlane.xlu0 %1535  ;;  %v6031_v45 = vpop.xlane.xlu1 %1547  ;;  %v2281_v18 = vrot.slane %v5922_v22, %v5825_v28 }
 0x3fc   :  { %v6036_v19 = vsel %vm1857_vm14, %v1696_v29, %v1856_v32  ;;  %v6039_v25 = vsel %vm1857_vm14, %v1948_v10, %v2105_v17  ;;  %v6042_v42 = vsel %vm1857_vm14, %v2193_v20, %v2350_v5  ;;  %v2040_v38 = vrot.slane %v5988_v61, %v5812_v7 }
 0x3fd   :  { %v2285_v3 = vrot.slane %v5988_v61, %v5828_v21  ;;  %v1793_v55 = vrot.slane %v1536_v26, %v5822_v9  ;;  %v2045_v50 = vrot.slane %v1536_v26, %v5836_v60  ;;  %v1798_v22 = vrot.slane %v5990_v54, %v5803_v46 }
 0x3fe   :  { %v2290_v61 = vrot.slane %v1536_v26, %v5839_v1  ;;  %v2041_v8 = vsel %vm1884_vm6, %v2040_v38, %v2036_v48  ;;  %v1956_v5 = vrot.slane %v6010_v11, %v5812_v7  ;;  %v1835_v20 = vrot.slane %v5794_v49, %v5822_v9 }
 0x3ff   :  { %v1542_v59 = vpop.xlane.xlu0 %1541  ;;  %v1482_v34 = vpop.xlane.xlu1 %1481  ;;  %v2286_v15 = vsel %vm2129_vm8, %v2285_v3, %v2281_v18  ;;  %v1794_v35 = vsel %vm1639_vm7, %v1793_v55, %v1789_v62  ;;  %v2046_v41 = vsel %vm1891_vm9, %v2045_v50, %v2041_v8  ;;  %v2201_v26 = vrot.slane %v6010_v11, %v5828_v21 }
 0x400   :  { %v1802_v30 = vrot.slane %v1542_v59, %v5806_v51  ;;  %v2054_v24 = vrot.slane %v1542_v59, %v5812_v7  ;;  %v2299_v14 = vrot.slane %v1542_v59, %v5828_v21  ;;  %v2291_v53 = vsel %vm2136_vm10, %v2290_v61, %v2286_v15 }
 0x401   :  { %v1867_v43 = vsel %vm1855_vm13, %v1794_v35, %v1866_v31  ;;  %v2357_v56 = vsel %vm1855_vm13, %v2291_v53, %v2356_v47  ;;  %v1723_v31 = vrot.slane %v5800_v63, %v5822_v9  ;;  %v1709_v50 = vrot.slane %v1482_v34, %v5822_v9 }
 0x402   :  { %v1803_v39 = vsel %vm1632_vm5, %v1802_v30, %v1798_v22  ;;  %v2055_v54 = vsel %vm1884_vm6, %v2054_v24, %v2050_v58  ;;  %v2300_v6 = vsel %vm2129_vm8, %v2299_v14, %v2295_v13  ;;  %v1961_v11 = vrot.slane %v1482_v34, %v5836_v60 }
 0x403   :  { %v1808_v48 = vsel %vm1639_vm7, %v1807_v36, %v1803_v39  ;;  %v2060_v0 = vsel %vm1891_vm9, %v2059_v37, %v2055_v54  ;;  %v1476_v32 = vpop.xlane.xlu0 %1475  ;;  %v1488_v17 = vpop.xlane.xlu1 %1487  ;;  %v2305_v44 = vsel %vm2136_vm10, %v2304_v27, %v2300_v6  ;;  %v2112_v37 = vsel %vm1855_vm13, %v2046_v41, %v2111_v33 }
 0x404   :  { %v1700_v57 = vrot.slane %v1476_v32, %v5803_v46  ;;  %v1952_v36 = vrot.slane %v1476_v32, %v5809_v2  ;;  %v2197_v29 = vrot.slane %v1476_v32, %v5825_v28  ;;  %v6100_v10 = vsel %vm1857_vm14, %v1808_v48, %v1867_v43 }
 0x405   :  { %v6106_v27 = vsel %vm1857_vm14, %v2060_v0, %v2112_v37  ;;  %v6115_v55 = vsel %vm1857_vm14, %v2305_v44, %v2357_v56  ;;  %v1975_v33 = vrot.slane %v5800_v63, %v5836_v60  ;;  %v2220_v22 = vrot.slane %v5800_v63, %v5839_v1 }
 0x406   :  { %v1705_v23 = vsel %vm1632_vm5, %v1704_v40, %v1700_v57  ;;  %v1957_v18 = vsel %vm1884_vm6, %v1956_v5, %v1952_v36  ;;  %v1812_v58 = vrot.slane %v6031_v45, %v5803_v46  ;;  %v2202_v61 = vsel %vm2129_vm8, %v2201_v26, %v2197_v29 }
 0x407   :  { %v1551_v38 = vpop.xlane.xlu0 %1550  ;;  %v6112_v3 = vpop.xlane.xlu1 %1556  ;;  %v2064_v47 = vrot.slane %v6031_v45, %v5809_v2  ;;  %v2206_v59 = vrot.slane %v1482_v34, %v5839_v1  ;;  %v1710_v62 = vsel %vm1639_vm7, %v1709_v50, %v1705_v23  ;;  %v1962_v13 = vsel %vm1891_vm9, %v1961_v11, %v1957_v18 }
 0x408   :  { %v2309_v30 = vrot.slane %v6031_v45, %v5825_v28  ;;  %v1718_v24 = vrot.slane %v1488_v17, %v5806_v51  ;;  %v1970_v63 = vrot.slane %v1488_v17, %v5812_v7  ;;  %v2215_v8 = vrot.slane %v1488_v17, %v5828_v21 }
 0x409   :  { %v2207_v14 = vsel %vm2136_vm10, %v2206_v59, %v2202_v61  ;;  %v1860_v45 = vsel %vm1859_vm15, %v1710_v62, %v6036_v19  ;;  %v2107_v39 = vsel %vm1859_vm15, %v1962_v13, %v6039_v25  ;;  %v1816_v54 = vrot.slane %v1551_v38, %v5806_v51 }
 0x40a   :  { %v2068_v53 = vrot.slane %v1551_v38, %v5812_v7  ;;  %v2313_v48 = vrot.slane %v1551_v38, %v5828_v21  ;;  %v2352_v17 = vsel %vm1859_vm15, %v2207_v14, %v6042_v42  ;;  %v2332_v42 = vrot.slane %v5794_v49, %v5839_v1 }
 0x40b   :  { %v1485_v15 = vpop.xlane.xlu0 %1484  ;;  %v6140_v35 = vpop.xlane.xlu1 %1496  ;;  %v1817_v56 = vsel %vm1632_vm5, %v1816_v54, %v1812_v58  ;;  %v2078_v11 = vrot.slane %v6112_v3, %v5809_v2 }
 0x40c   :  { %v1714_v34 = vrot.slane %v1485_v15, %v5803_v46  ;;  %v1966_v40 = vrot.slane %v1485_v15, %v5809_v2  ;;  %v2211_v41 = vrot.slane %v1485_v15, %v5825_v28  ;;  %v2069_v18 = vsel %vm1884_vm6, %v2068_v53, %v2064_v47 }
 0x40d   :  { %v2314_v38 = vsel %vm2129_vm8, %v2313_v48, %v2309_v30  ;;  %v1732_v47 = vrot.slane %v6140_v35, %v5806_v51  ;;  %v1984_v62 = vrot.slane %v6140_v35, %v5812_v7 }
 0x40e   :  { %v1719_v0 = vsel %vm1632_vm5, %v1718_v24, %v1714_v34  ;;  %v1971_v6 = vsel %vm1884_vm6, %v1970_v63, %v1966_v40  ;;  %v2216_v32 = vsel %vm2129_vm8, %v2215_v8, %v2211_v41  ;;  %v2229_v24 = vrot.slane %v6140_v35, %v5828_v21 }
 0x40f   :  { %v1724_v19 = vsel %vm1639_vm7, %v1723_v31, %v1719_v0  ;;  %v1976_v43 = vsel %vm1891_vm9, %v1975_v33, %v1971_v6  ;;  %v2221_v25 = vsel %vm2136_vm10, %v2220_v22, %v2216_v32  ;;  %v1554_v44 = vpop.xlane.xlu0 %1553  ;;  %v6161_v57 = vpop.xlane.xlu1 %1565  ;;  %v1826_v31 = vrot.slane %v6112_v3, %v5803_v46 }
 0x410   :  { %v1862_v36 = vsel %vm1861_vm1, %v1724_v19, %v1860_v45  ;;  %v2108_v5 = vsel %vm1861_vm1, %v1976_v43, %v2107_v39  ;;  %v2353_v37 = vsel %vm1861_vm1, %v2221_v25, %v2352_v17  ;;  %v1821_v29 = vrot.slane %v1554_v44, %v5822_v9 }
 0x411   :  { %v2073_v26 = vrot.slane %v1554_v44, %v5836_v60  ;;  %v2318_v23 = vrot.slane %v1554_v44, %v5839_v1  ;;  %v2323_v33 = vrot.slane %v6112_v3, %v5825_v28 }
 0x412   :  { %v1822_v50 = vsel %vm1639_vm7, %v1821_v29, %v1817_v56 }
 0x413   :  { %v2074_v22 = vsel %vm1891_vm9, %v2073_v26, %v2069_v18  ;;  %v2319_v58 = vsel %vm2136_vm10, %v2318_v23, %v2314_v38  ;;  %v1560_v61 = vpop.xlane.xlu0 %1559  ;;  %v1500_v59 = vpop.xlane.xlu1 %1499  ;;  %v1869_v3 = vsel %vm1859_vm15, %v1822_v50, %v6100_v10  ;;  %v1840_v26 = vrot.slane %v6161_v57, %v5803_v46 }
 0x414   :  { %v1830_v13 = vrot.slane %v1560_v61, %v5806_v51  ;;  %v2082_v30 = vrot.slane %v1560_v61, %v5812_v7  ;;  %v2114_v63 = vsel %vm1859_vm15, %v2074_v22, %v6106_v27  ;;  %v2327_v8 = vrot.slane %v1560_v61, %v5828_v21 }
 0x415   :  { %v2359_v15 = vsel %vm1859_vm15, %v2319_v58, %v6115_v55  ;;  %v1737_v40 = vrot.slane %v1500_v59, %v5822_v9  ;;  %v1989_v55 = vrot.slane %v1500_v59, %v5836_v60  ;;  %v2092_v23 = vrot.slane %v6161_v57, %v5809_v2 }
 0x416   :  { %v1831_v14 = vsel %vm1632_vm5, %v1830_v13, %v1826_v31  ;;  %v2083_v34 = vsel %vm1884_vm6, %v2082_v30, %v2078_v11  ;;  %v2328_v27 = vsel %vm2129_vm8, %v2327_v8, %v2323_v33  ;;  %v2337_v31 = vrot.slane %v6161_v57, %v5825_v28 }
 0x417   :  { %v1836_v35 = vsel %vm1639_vm7, %v1835_v20, %v1831_v14  ;;  %v2088_v10 = vsel %vm1891_vm9, %v2087_v52, %v2083_v34  ;;  %v1494_v41 = vpop.xlane.xlu0 %1493  ;;  %v2333_v45 = vsel %vm2136_vm10, %v2332_v42, %v2328_v27  ;;  %v2234_v20 = vrot.slane %v1500_v59, %v5839_v1 }
 0x418   :  { %v1728_v39 = vrot.slane %v1494_v41, %v5803_v46  ;;  %v1980_v54 = vrot.slane %v1494_v41, %v5809_v2  ;;  %v2225_v53 = vrot.slane %v1494_v41, %v5825_v28  ;;  %v1870_v48 = vsel %vm1861_vm1, %v1836_v35, %v1869_v3 }
 0x419   :  { %v2115_v49 = vsel %vm1861_vm1, %v2088_v10, %v2114_v63  ;;  %v2360_v52 = vsel %vm1861_vm1, %v2333_v45, %v2359_v15 }
 0x41a   :  { %v1733_v0 = vsel %vm1632_vm5, %v1732_v47, %v1728_v39  ;;  %v1985_v6 = vsel %vm1884_vm6, %v1984_v62, %v1980_v54  ;;  %v2230_v32 = vsel %vm2129_vm8, %v2229_v24, %v2225_v53 }
 0x41b   :  { %v1738_v17 = vsel %vm1639_vm7, %v1737_v40, %v1733_v0  ;;  %v1990_v19 = vsel %vm1891_vm9, %v1989_v55, %v1985_v6  ;;  %v2235_v43 = vsel %vm2136_vm10, %v2234_v20, %v2230_v32  ;;  %v1569_v25 = vpop.xlane.xlu0 %1568 }
 0x41c   :  { %v1864_v44 = vsel %vm1863_vm3, %v1738_v17, %v1862_v36  ;;  %v2109_v29 = vsel %vm1863_vm3, %v1990_v19, %v2108_v5  ;;  %v2354_v42 = vsel %vm1863_vm3, %v2235_v43, %v2353_v37  ;;  %v1844_v56 = vrot.slane %v1569_v25, %v5806_v51 }
 0x41d   :  { %v2368_v18 = vcombine.high %v1864_v44, %v6757_v4  ;;  %v2096_v38 = vrot.slane %v1569_v25, %v5812_v7  ;;  %v2375_v36 = vrot.slane %v1864_v44, %v5201_v12  ;;  %v2434_v5 = vcombine.high %v2109_v29, %v6757_v4 }
 0x41e   :  { %v2341_v37 = vrot.slane %v1569_v25, %v5828_v21  ;;  %v2441_v50 = vrot.slane %v2109_v29, %v5201_v12  ;;  %v2500_v11 = vcombine.high %v2354_v42, %v6757_v4  ;;  %v2507_v7 = vrot.slane %v2354_v42, %v5201_v12 }
 0x41f   :  { %v1572_v51 = vpop.xlane.xlu0 %1571  ;;  %v1845_v58 = vsel %vm1632_vm5, %v1844_v56, %v1840_v26  ;;  %v2097_v57 = vsel %vm1884_vm6, %v2096_v38, %v2092_v23  ;;  %v2382_v59 = vrot.slane %v2368_v18, %v5201_v12  ;;  %vm3238_vm5 = vcmask 21504  }
 0x420   :  { %v1849_v33 = vrot.slane %v1572_v51, %v5822_v9  ;;  %v2101_v22 = vrot.slane %v1572_v51, %v5836_v60  ;;  %v2346_v61 = vrot.slane %v1572_v51, %v5839_v1  ;;  %v2342_v21 = vsel %vm2129_vm8, %v2341_v37, %v2337_v31 }
 0x421   :  { %v2448_v9 = vrot.slane %v2434_v5, %v5201_v12  ;;  %v2514_v8 = vrot.slane %v2500_v11, %v5201_v12  ;;  %vm3907_vm6 = vcmask 31744   ;;  %vm4805_vm8 = vcmask 80896  }
 0x422   :  { %v1850_v47 = vsel %vm1639_vm7, %v1849_v33, %v1845_v58  ;;  %v2102_v62 = vsel %vm1891_vm9, %v2101_v22, %v2097_v57  ;;  %v2347_v30 = vsel %vm2136_vm10, %v2346_v61, %v2342_v21  ;;  %vm4803_vm7 = vcmask 64512  }
 0x423   :  { %v1871_v60 = vsel %vm1863_vm3, %v1850_v47, %v1870_v48  ;;  %v2116_v13 = vsel %vm1863_vm3, %v2102_v62, %v2115_v49  ;;  %v2361_v24 = vsel %vm1863_vm3, %v2347_v30, %v2360_v52  ;;  %vm4807_vm9 = vcmask 97280  }
 0x424   :  { %v2383_v1 = vcombine.high %v1871_v60, %v6757_v4  ;;  %v2390_v3 = vrot.slane %v1871_v60, %v5201_v12  ;;  %v2449_v63 = vcombine.high %v2116_v13, %v6757_v4  ;;  %v2456_v15 = vrot.slane %v2116_v13, %v5201_v12 }
 0x425   :  { %v2515_v14 = vcombine.high %v2361_v24, %v6757_v4  ;;  %v2522_v34 = vrot.slane %v2361_v24, %v5201_v12  ;;  %vm4809_vm10 = vcmask 113664  }
 0x426   :  { %v2397_v40 = vrot.slane %v2383_v1, %v5201_v12  ;;  %v2398_v35 = vcombine.low %v2375_v36, %v2390_v3  ;;  %v2399_v10 = vcombine.high %v2375_v36, %v2390_v3  ;;  %v2463_v27 = vrot.slane %v2449_v63, %v5201_v12 }
 0x427   :  { %v2464_v55 = vcombine.low %v2441_v50, %v2456_v15  ;;  %v2465_v41 = vcombine.high %v2441_v50, %v2456_v15  ;;  %v2529_v45 = vrot.slane %v2515_v14, %v5201_v12  ;;  %v2530_v39 = vcombine.low %v2507_v7, %v2522_v34 }
 0x428   :  { %v2406_v54 = vrot.slane %v2398_v35, %v5208_v16  ;;  %v2413_v53 = vrot.slane %v2399_v10, %v5208_v16  ;;  %v2414_v20 = vcombine.low %v2382_v59, %v2397_v40  ;;  %v2415_v48 = vcombine.high %v2382_v59, %v2397_v40 }
 0x429   :  { %v2472_v49 = vrot.slane %v2464_v55, %v5208_v16  ;;  %v2479_v52 = vrot.slane %v2465_v41, %v5208_v16  ;;  %v2480_v0 = vcombine.low %v2448_v9, %v2463_v27  ;;  %v2481_v6 = vcombine.high %v2448_v9, %v2463_v27 }
 0x42a   :  { %v2531_v32 = vcombine.high %v2507_v7, %v2522_v34  ;;  %v2546_v17 = vcombine.low %v2514_v8, %v2529_v45  ;;  %v2547_v19 = vcombine.high %v2514_v8, %v2529_v45  ;;  %v2538_v43 = vrot.slane %v2530_v39, %v5208_v16 }
 0x42b   :  { %v2422_v25 = vrot.slane %v2414_v20, %v5208_v16  ;;  %v2429_v44 = vrot.slane %v2415_v48, %v5208_v16  ;;  %v2488_v29 = vrot.slane %v2480_v0, %v5208_v16  ;;  %v2495_v42 = vrot.slane %v2481_v6, %v5208_v16 }
 0x42c   :  { %v2545_v56 = vrot.slane %v2531_v32, %v5208_v16  ;;  %v2554_v26 = vrot.slane %v2546_v17, %v5208_v16  ;;  %v2561_v23 = vrot.slane %v2547_v19, %v5208_v16  ;;  %v2566_v18 = vcombine.low %v2406_v54, %v2413_v53 }
 0x42d   :  { %v4923_v38 = vcombine.high %v2406_v54, %v2413_v53  ;;  %v2582_v31 = vcombine.low %v2422_v25, %v2429_v44  ;;  %v4924_v36 = vcombine.high %v2422_v25, %v2429_v44  ;;  %v2616_v5 = vcombine.low %v2472_v49, %v2479_v52  ;;  %v4922_v53 = vld [vmem:[%s6719_s2 + $0x8] sm:$0xff] }
 0x42e   :  { %v2666_v37 = vcombine.low %v2538_v43, %v2545_v56  ;;  %v4927_v51 = vcombine.high %v2538_v43, %v2545_v56  ;;  %v2682_v50 = vcombine.low %v2554_v26, %v2561_v23  ;;  %v4928_v11 = vcombine.high %v2554_v26, %v2561_v23  ;;  %v4921_v44 = vld [vmem:[%s6718_s1 + $0x8] sm:$0xff]  ;;  %v6778_v26 = vld [vmem:[#allocation7_spill] sm:$0xff] }
 0x42f   :  { %v2573_v33 = vrot.slane %v2566_v18, %v5201_v12  ;;  %v2581_v22 = vrot.slane %v4923_v38, %v5201_v12  ;;  %v2589_v7 = vrot.slane %v2582_v31, %v5201_v12  ;;  %v2597_v58 = vrot.slane %v4924_v36, %v5201_v12 }
 0x430   :  { %v2673_v57 = vrot.slane %v2666_v37, %v5201_v12  ;;  %v2681_v61 = vrot.slane %v4927_v51, %v5201_v12  ;;  %v2689_v59 = vrot.slane %v2682_v50, %v5201_v12  ;;  %v2697_v21 = vrot.slane %v4928_v11, %v5201_v12 }
 0x431   :  { %v2598_v47 = vcombine.low %v2573_v33, %v2581_v22  ;;  %v2606_v62 = vcombine.low %v2589_v7, %v2597_v58  ;;  %v2623_v9 = vrot.slane %v2616_v5, %v5201_v12  ;;  %v4925_v60 = vcombine.high %v2472_v49, %v2479_v52  ;;  %v6776_v52 = vld [vmem:[#allocation6_spill] sm:$0xff] }
 0x432   :  { %v2698_v13 = vcombine.low %v2673_v57, %v2681_v61  ;;  %v2706_v30 = vcombine.low %v2689_v59, %v2697_v21  ;;  %v2632_v24 = vcombine.low %v2488_v29, %v2495_v42  ;;  %v4926_v1 = vcombine.high %v2488_v29, %v2495_v42 }
 0x433   :  { %v2605_v3 = vrot.slane %v2598_v47, %v5208_v16  ;;  %v2613_v63 = vrot.slane %v2606_v62, %v5208_v16  ;;  %v2631_v8 = vrot.slane %v4925_v60, %v5201_v12  ;;  %v6777_v42 = vmov 0.0|0.0  }
 0x434   :  { %v2705_v15 = vrot.slane %v2698_v13, %v5208_v16  ;;  %v2713_v14 = vrot.slane %v2706_v30, %v5208_v16  ;;  %v2639_v34 = vrot.slane %v2632_v24, %v5201_v12  ;;  %v2647_v40 = vrot.slane %v4926_v1, %v5201_v12 }
 0x435   :  { %v2615_v35 = vcombine.high %v2605_v3, %v2613_v63  ;;  %v2648_v10 = vcombine.low %v2623_v9, %v2631_v8  ;;  %v2614_v27 = vcombine.low %v2605_v3, %v2613_v63 }
 0x436   :  { %v2715_v55 = vcombine.high %v2705_v15, %v2713_v14  ;;  %v2656_v41 = vcombine.low %v2639_v34, %v2647_v40  ;;  %v2714_v45 = vcombine.low %v2705_v15, %v2713_v14 }
 0x437   :  { %v2655_v39 = vrot.slane %v2648_v10, %v5208_v16 }
 0x438   :  { %2723 = vrot.lane.b32.xlu0 %v2715_v55, %s5147_s28  ;;  %v2663_v54 = vrot.slane %v2656_v41, %v5208_v16 }
 0x43a   :  { %v2665_v20 = vcombine.high %v2655_v39, %v2663_v54  ;;  %v2664_v48 = vcombine.low %v2655_v39, %v2663_v54 }
 0x43c   :  { %v5078_v49 = vpack.i.bf16 %v2665_v20, %v2615_v35  ;;  %2931 = vperm.xlu0 %5077, %v4922_v53  }
 0x43e   :  { %5079 = vrot.lane.b32.xlu1 %v5078_v49, %s5147_s28 }
 0x442   :  { %2732 = vrot.lane.b32.xlu1 %v6776_v52, %s5147_s28  ;;  %s5094_s28 = scalar_lea.vmem %s4903_s0, 32 }
 0x443   :  { %p5095_p0 = scmp.ne.s32.totalorder %s4903_s0, %s5094_s28  ;;  %p5100_p2 = scmp.lt.s32.totalorder %s5094_s28, %s5094_s28 }
 0x445   :  { %p5101_p3 = por %p5100_p2, %p5099_p1 }
 0x447   :  { %p5102_p4 = pnand %p5101_p3, %p5095_p0 }
 0x4aa   :  { %v2724_v25 = vpop.permute.xlu0 %2723 }
 0x4ab   :  { %v2731_v29 = vsel %vm2728_vm4, %v2714_v45, %v2724_v25 }
 0x4b0   :  { %v5080_v0 = vpop.permute.xlu1 %5079 }
 0x4b1   :  { %v5082_v6 = vunpack.i.h.bf16 %v5080_v0  ;;  %v5081_v32 = vunpack.i.l.bf16 %v5080_v0 }
 0x4b3   :  { %v2729_v17 = vsel %vm2728_vm4, %v2614_v27, %v5081_v32  ;;  %v2730_v19 = vsel %vm2728_vm4, %v2664_v48, %v5082_v6 }
 0x4b4   :  { %v5022_v43 = vpack.c.bf16 %v2730_v19, %v2729_v17  ;;  %v2733_v56 = vpop.permute.xlu1 %2732 }
 0x4b5   :  { %v2735_v23 = vsel %vm2728_vm4, %v6778_v26, %v2733_v56 }
 0x4b6   :  { %5023 = vmatpush3.bf16.msra.mxu1 %v5022_v43 }
 0x4b7   :  { %4988 = vmatprep.subr.mxu1 %v6757_v4 }
 0x4ba   :  { %4989 = vmatpush3.msra.mxu1 %v2731_v29 }
 0x4bb   :  { %4991 = vmatmul.mubr.msk.f32.vlgmr.msra.gmra.mrb[0].mxu1 %vm428_vm2, %v4921_v44  ;;  %5027 = vmatprep.subr.bf16.mxu1 %v6777_v42  ;;  %v2932_v35 = vpop.permute.xlu0 %2931 }
 0x4bc   :  { %5008 = vmatprep.mubr.msk.f32.mxu1 %vm5124_vm0, %v6757_v4 }
 0x58e   :  { %v2805_v18 = vpop.f32.mrb[0].mxu1 }
 0x58f   :  { %v2806_v38 = vadd.f32 %v2805_v18, %v2735_v23  ;;  %v4992_v31 = vpop.f32.mrb[1].mxu1 }
 0x591   :  { %2810 = vrot.lane.b32.xlu1 %v2806_v38, %s5133_s13  ;;  %v2813_v36 = vcombine.high %v2806_v38, %v6757_v4  ;;  %v2820_v37 = vrot.slane %v2806_v38, %v5201_v12  ;;  %s5149_s13 = smov 124  }
 0x593   :  { %v2827_v11 = vrot.slane %v2813_v36, %v5201_v12 }
 0x603   :  { %v2811_v5 = vpop.permute.xlu1 %2810 }
 0x604   :  { %v2828_v51 = vcombine.high %v2811_v5, %v6757_v4  ;;  %v2835_v50 = vrot.slane %v2811_v5, %v5201_v12 }
 0x606   :  { %v2842_v33 = vrot.slane %v2828_v51, %v5201_v12  ;;  %v2843_v22 = vcombine.low %v2820_v37, %v2835_v50  ;;  %v2844_v7 = vcombine.high %v2820_v37, %v2835_v50 }
 0x608   :  { %v2851_v58 = vrot.slane %v2843_v22, %v5208_v16  ;;  %v2858_v57 = vrot.slane %v2844_v7, %v5208_v16  ;;  %v2859_v61 = vcombine.low %v2827_v11, %v2842_v33  ;;  %v2860_v59 = vcombine.high %v2827_v11, %v2842_v33 }
 0x60a   :  { %v2867_v21 = vrot.slane %v2859_v61, %v5208_v16  ;;  %v2874_v47 = vrot.slane %v2860_v59, %v5208_v16  ;;  %v2879_v62 = vcombine.low %v2851_v58, %v2858_v57  ;;  %v4930_v9 = vcombine.high %v2851_v58, %v2858_v57 }
 0x60c   :  { %v2886_v60 = vrot.slane %v2879_v62, %v5201_v12  ;;  %v2894_v13 = vrot.slane %v4930_v9, %v5201_v12  ;;  %v2895_v30 = vcombine.low %v2867_v21, %v2874_v47  ;;  %v4931_v24 = vcombine.high %v2867_v21, %v2874_v47 }
 0x60e   :  { %v2902_v1 = vrot.slane %v2895_v30, %v5201_v12  ;;  %v2910_v3 = vrot.slane %v4931_v24, %v5201_v12  ;;  %v2911_v63 = vcombine.low %v2886_v60, %v2894_v13 }
 0x610   :  { %v2919_v8 = vcombine.low %v2902_v1, %v2910_v3  ;;  %v2918_v15 = vrot.slane %v2911_v63, %v5208_v16 }
 0x612   :  { %v2926_v14 = vrot.slane %v2919_v8, %v5208_v16 }
 0x614   :  { %v2927_v34 = vcombine.low %v2918_v15, %v2926_v14  ;;  %v2928_v40 = vcombine.high %v2918_v15, %v2926_v14 }
 0x616   :  { %v2934_v10 = vadd.f32 %v2932_v35, %v2927_v34  ;;  %v2935_v27 = vadd.f32 %v2932_v35, %v2928_v40 }
 0x618   :  { %v6327_v55 = vmax.f32 %v2934_v10, 0.0  ;;  %v6329_v41 = vmax.f32 %v2935_v27, 0.0 }
 0x61a   :  { %2942 = vrot.lane.b32.xlu0 %v6329_v41, %s5129_s9  ;;  %2940 = vrot.lane.b32.xlu1 %v6327_v55, %s5129_s9 }
 0x61e   :  { %2948 = vrot.lane.b32.xlu0 %v6329_v41, %s5128_s8  ;;  %2946 = vrot.lane.b32.xlu1 %v6327_v55, %s5128_s8  ;;  %s5148_s8 = smov 4  }
 0x622   :  { %2954 = vrot.lane.b32.xlu0 %v6329_v41, %s5130_s10  ;;  %2952 = vrot.lane.b32.xlu1 %v6327_v55, %s5130_s10 }
 0x626   :  { %2960 = vrot.lane.b32.xlu0 %v6329_v41, %s5131_s11  ;;  %2958 = vrot.lane.b32.xlu1 %v6327_v55, %s5131_s11 }
 0x62a   :  { %2966 = vrot.lane.b32.xlu0 %v6329_v41, %s5132_s12  ;;  %2964 = vrot.lane.b32.xlu1 %v6327_v55, %s5132_s12 }
 0x68c   :  { %v2943_v45 = vpop.permute.xlu0 %2942  ;;  %v2941_v39 = vpop.permute.xlu1 %2940 }
 0x690   :  { %v2949_v54 = vpop.permute.xlu0 %2948  ;;  %v2947_v53 = vpop.permute.xlu1 %2946 }
 0x691   :  { %v2970_v0 = vcombine.low %v6327_v55, %v2947_v53  ;;  %v3104_v19 = vcombine.low %v6329_v41, %v2949_v54  ;;  %v3105_v51 = vcombine.high %v6329_v41, %v2949_v54  ;;  %v2971_v50 = vcombine.high %v6327_v55, %v2947_v53 }
 0x693   :  { %v2978_v25 = vrot.slane %v2970_v0, %v5201_v12  ;;  %v3112_v38 = vrot.slane %v3104_v19, %v5201_v12  ;;  %v3119_v53 = vrot.slane %v3105_v51, %v5201_v12 }
 0x694   :  { %v2955_v20 = vpop.permute.xlu0 %2954  ;;  %v2953_v48 = vpop.permute.xlu1 %2952 }
 0x695   :  { %v2986_v49 = vcombine.low %v2941_v39, %v2953_v48  ;;  %v3120_v6 = vcombine.low %v2943_v45, %v2955_v20  ;;  %v3121_v61 = vcombine.high %v2943_v45, %v2955_v20  ;;  %v2987_v9 = vcombine.high %v2941_v39, %v2953_v48 }
 0x696   :  { %v2985_v20 = vrot.slane %v2971_v50, %v5201_v12 }
 0x697   :  { %v2994_v43 = vrot.slane %v2986_v49, %v5201_v12  ;;  %v3128_v44 = vrot.slane %v3120_v6, %v5201_v12  ;;  %v3135_v41 = vrot.slane %v3121_v61, %v5201_v12  ;;  %v3001_v45 = vrot.slane %v2987_v9, %v5201_v12 }
 0x698   :  { %v2961_v32 = vpop.permute.xlu0 %2960  ;;  %v2959_v17 = vpop.permute.xlu1 %2958 }
 0x699   :  { %v3143_v23 = vrot.slane %v2961_v32, %v5201_v12  ;;  %v3032_v31 = vcombine.low %v2978_v25, %v2994_v43  ;;  %v3009_v36 = vrot.slane %v2959_v17, %v5201_v12  ;;  %v3166_v11 = vcombine.low %v3112_v38, %v3128_v44 }
 0x69a   :  { %v3167_v62 = vcombine.high %v3112_v38, %v3128_v44  ;;  %v3136_v60 = vcombine.high %v2961_v32, %v6757_v4  ;;  %v3002_v13 = vcombine.high %v2959_v17, %v6757_v4  ;;  %v3033_v30 = vcombine.high %v2978_v25, %v2994_v43 }
 0x69b   :  { %v3040_v59 = vrot.slane %v3032_v31, %v5208_v16  ;;  %v3174_v3 = vrot.slane %v3166_v11, %v5208_v16  ;;  %v3182_v19 = vcombine.low %v3119_v53, %v3135_v41  ;;  %v3048_v43 = vcombine.low %v2985_v20, %v3001_v45 }
 0x69c   :  { %v2967_v29 = vpop.permute.xlu0 %2966  ;;  %v2965_v56 = vpop.permute.xlu1 %2964  ;;  %v3150_v27 = vrot.slane %v3136_v60, %v5201_v12  ;;  %v3016_v55 = vrot.slane %v3002_v13, %v5201_v12  ;;  %v3047_v39 = vrot.slane %v3033_v30, %v5208_v16  ;;  %v3181_v54 = vrot.slane %v3167_v62, %v5208_v16 }
 0x69d   :  { %v3158_v18 = vrot.slane %v2967_v29, %v5201_v12  ;;  %v3024_v5 = vrot.slane %v2965_v56, %v5201_v12  ;;  %v3151_v22 = vcombine.high %v2967_v29, %v6757_v4  ;;  %v3017_v58 = vcombine.high %v2965_v56, %v6757_v4 }
 0x69e   :  { %v3190_v38 = vrot.slane %v3182_v19, %v5208_v16  ;;  %v3056_v31 = vrot.slane %v3048_v43, %v5208_v16 }
 0x69f   :  { %v3198_v37 = vcombine.low %v3143_v23, %v3158_v18  ;;  %v3064_v33 = vcombine.low %v3009_v36, %v3024_v5  ;;  %v3199_v7 = vcombine.high %v3143_v23, %v3158_v18  ;;  %v3065_v57 = vcombine.high %v3009_v36, %v3024_v5 }
 0x6a0   :  { %v3165_v63 = vrot.slane %v3151_v22, %v5201_v12  ;;  %v3031_v8 = vrot.slane %v3017_v58, %v5201_v12  ;;  %v3049_v22 = vcombine.high %v2985_v20, %v3001_v45 }
 0x6a1   :  { %v3072_v21 = vrot.slane %v3064_v33, %v5208_v16  ;;  %v3206_v47 = vrot.slane %v3198_v37, %v5208_v16  ;;  %v3079_v15 = vrot.slane %v3065_v57, %v5208_v16  ;;  %v3213_v14 = vrot.slane %v3199_v7, %v5208_v16 }
 0x6a2   :  { %v3214_v48 = vcombine.low %v3150_v27, %v3165_v63  ;;  %v3080_v49 = vcombine.low %v3016_v55, %v3031_v8  ;;  %v3215_v36 = vcombine.high %v3150_v27, %v3165_v63  ;;  %v3081_v5 = vcombine.high %v3016_v55, %v3031_v8 }
 0x6a3   :  { %v3097_v24 = vcombine.high %v3040_v59, %v3072_v21  ;;  %v3096_v1 = vcombine.low %v3040_v59, %v3072_v21  ;;  %v3230_v35 = vcombine.low %v3174_v3, %v3206_v47  ;;  %v3231_v10 = vcombine.high %v3174_v3, %v3206_v47 }
 0x6a4   :  { %v3098_v32 = vcombine.low %v3047_v39, %v3079_v15  ;;  %v3232_v17 = vcombine.low %v3181_v54, %v3213_v14  ;;  %v3099_v25 = vcombine.high %v3047_v39, %v3079_v15  ;;  %v3233_v44 = vcombine.high %v3181_v54, %v3213_v14 }
 0x6a5   :  { %v3242_v34 = vsel %vm3238_vm5, %v3097_v24, -inf  ;;  %v3239_v40 = vsel %vm3238_vm5, %v3096_v1, -inf  ;;  %v3263_v0 = vsel %vm3238_vm5, %v3230_v35, -inf  ;;  %v3266_v6 = vsel %vm3238_vm5, %v3231_v10, -inf }
 0x6a6   :  { %3243 = vmax.xlane.f32.xlu0 %v3242_v34  ;;  %3240 = vmax.xlane.f32.xlu1 %v3239_v40  ;;  %v3245_v29 = vsel %vm3238_vm5, %v3098_v32, -inf  ;;  %v3269_v56 = vsel %vm3238_vm5, %v3232_v17, -inf  ;;  %v3222_v23 = vrot.slane %v3214_v48, %v5208_v16  ;;  %v3088_v18 = vrot.slane %v3080_v49, %v5208_v16 }
 0x6a7   :  { %v3248_v37 = vsel %vm3238_vm5, %v3099_v25, -inf  ;;  %v3272_v51 = vsel %vm3238_vm5, %v3233_v44, -inf  ;;  %v3183_v33 = vcombine.high %v3119_v53, %v3135_v41  ;;  %v3229_v7 = vrot.slane %v3215_v36, %v5208_v16 }
 0x6a8   :  { %v3234_v50 = vcombine.low %v3190_v38, %v3222_v23  ;;  %v3100_v11 = vcombine.low %v3056_v31, %v3088_v18  ;;  %v3095_v58 = vrot.slane %v3081_v5, %v5208_v16  ;;  %v3235_v59 = vcombine.high %v3190_v38, %v3222_v23 }
 0x6a9   :  { %v3101_v21 = vcombine.high %v3056_v31, %v3088_v18  ;;  %v3197_v47 = vrot.slane %v3183_v33, %v5208_v16  ;;  %v3063_v62 = vrot.slane %v3049_v22, %v5208_v16 }
 0x6aa   :  { %3264 = vmax.xlane.f32.xlu0 %v3263_v0  ;;  %3267 = vmax.xlane.f32.xlu1 %v3266_v6  ;;  %v3275_v57 = vsel %vm3238_vm5, %v3234_v50, -inf  ;;  %v3251_v61 = vsel %vm3238_vm5, %v3100_v11, -inf  ;;  %v3278_v9 = vsel %vm3238_vm5, %v3235_v59, -inf }
 0x6ab   :  { %v3254_v60 = vsel %vm3238_vm5, %v3101_v21, -inf  ;;  %v3236_v13 = vcombine.low %v3197_v47, %v3229_v7  ;;  %v3102_v30 = vcombine.low %v3063_v62, %v3095_v58  ;;  %v3237_v3 = vcombine.high %v3197_v47, %v3229_v7 }
 0x6ac   :  { %v3103_v63 = vcombine.high %v3063_v62, %v3095_v58 }
 0x6ad   :  { %v3281_v24 = vsel %vm3238_vm5, %v3236_v13, -inf  ;;  %v3257_v1 = vsel %vm3238_vm5, %v3102_v30, -inf  ;;  %v3284_v8 = vsel %vm3238_vm5, %v3237_v3, -inf }
 0x6ae   :  { %3246 = vmax.xlane.f32.xlu0 %v3245_v29  ;;  %3270 = vmax.xlane.f32.xlu1 %v3269_v56  ;;  %v3260_v15 = vsel %vm3238_vm5, %v3103_v63, -inf }
 0x6b2   :  { %3249 = vmax.xlane.f32.xlu0 %v3248_v37  ;;  %3273 = vmax.xlane.f32.xlu1 %v3272_v51 }
 0x6b6   :  { %3276 = vmax.xlane.f32.xlu1 %v3275_v57  ;;  %3252 = vmax.xlane.f32.xlu0 %v3251_v61 }
 0x6ba   :  { %3279 = vmax.xlane.f32.xlu1 %v3278_v9  ;;  %3255 = vmax.xlane.f32.xlu0 %v3254_v60 }
 0x6be   :  { %3282 = vmax.xlane.f32.xlu1 %v3281_v24  ;;  %3258 = vmax.xlane.f32.xlu0 %v3257_v1 }
 0x6c2   :  { %3285 = vmax.xlane.f32.xlu1 %v3284_v8  ;;  %3261 = vmax.xlane.f32.xlu0 %v3260_v15 }
 0x733   :  { %v3244_v14 = vpop.xlane.xlu0 %3243  ;;  %v3241_v34 = vpop.xlane.xlu1 %3240 }
 0x734   :  { %v3310_v55 = vrot.slane %v3244_v14, %v5803_v46  ;;  %v3390_v41 = vrot.slane %v3244_v14, %v5809_v2  ;;  %v3306_v45 = vrot.slane %v3241_v34, %v5803_v46  ;;  %v3386_v39 = vrot.slane %v3241_v34, %v5809_v2 }
 0x735   :  { %v3470_v54 = vrot.slane %v3244_v14, %v5825_v28  ;;  %v3466_v53 = vrot.slane %v3241_v34, %v5825_v28 }
 0x736   :  { %v3367_v44 = vsel %vm1851_vm11, %v3310_v55, %v3306_v45  ;;  %v3447_v29 = vsel %vm1851_vm11, %v3390_v41, %v3386_v39 }
 0x737   :  { %v3265_v40 = vpop.xlane.xlu0 %3264  ;;  %v3268_v35 = vpop.xlane.xlu1 %3267  ;;  %v3527_v56 = vsel %vm1851_vm11, %v3470_v54, %v3466_v53 }
 0x738   :  { %v3338_v20 = vrot.slane %v3265_v40, %v5803_v46  ;;  %v3342_v48 = vrot.slane %v3268_v35, %v5803_v46  ;;  %v3418_v49 = vrot.slane %v3265_v40, %v5809_v2  ;;  %v3498_v0 = vrot.slane %v3265_v40, %v5825_v28 }
 0x739   :  { %v3422_v6 = vrot.slane %v3268_v35, %v5809_v2  ;;  %v3502_v32 = vrot.slane %v3268_v35, %v5825_v28 }
 0x73a   :  { %v3374_v23 = vsel %vm1851_vm11, %v3342_v48, %v3338_v20 }
 0x73b   :  { %v3247_v10 = vpop.xlane.xlu0 %3246  ;;  %v3271_v27 = vpop.xlane.xlu1 %3270  ;;  %v3454_v51 = vsel %vm1851_vm11, %v3422_v6, %v3418_v49  ;;  %v3534_v50 = vsel %vm1851_vm11, %v3502_v32, %v3498_v0  ;;  %vm4820_vm11 = vcmask 130048  }
 0x73c   :  { %v3314_v17 = vrot.slane %v3247_v10, %v5803_v46  ;;  %v3394_v19 = vrot.slane %v3247_v10, %v5809_v2  ;;  %v3474_v18 = vrot.slane %v3247_v10, %v5825_v28  ;;  %v3346_v38 = vrot.slane %v3271_v27, %v5803_v46 }
 0x73d   :  { %v3426_v31 = vrot.slane %v3271_v27, %v5809_v2  ;;  %v3506_v36 = vrot.slane %v3271_v27, %v5825_v28 }
 0x73e   :  { %v3368_v11 = vsel %vm1853_vm12, %v3314_v17, %v3367_v44  ;;  %v3448_v33 = vsel %vm1853_vm12, %v3394_v19, %v3447_v29  ;;  %v3528_v21 = vsel %vm1853_vm12, %v3474_v18, %v3527_v56  ;;  %v3375_v47 = vsel %vm1853_vm12, %v3346_v38, %v3374_v23 }
 0x73f   :  { %v3250_v43 = vpop.xlane.xlu0 %3249  ;;  %v3274_v25 = vpop.xlane.xlu1 %3273  ;;  %v3455_v60 = vsel %vm1853_vm12, %v3426_v31, %v3454_v51  ;;  %v3535_v13 = vsel %vm1853_vm12, %v3506_v36, %v3534_v50  ;;  %vm4894_vm12 = vcmask 25600  }
 0x740   :  { %v3318_v5 = vrot.slane %v3250_v43, %v5803_v46  ;;  %v3398_v37 = vrot.slane %v3250_v43, %v5809_v2  ;;  %v3478_v58 = vrot.slane %v3250_v43, %v5825_v28  ;;  %v3350_v57 = vrot.slane %v3274_v25, %v5803_v46 }
 0x741   :  { %v3430_v61 = vrot.slane %v3274_v25, %v5809_v2  ;;  %v3510_v59 = vrot.slane %v3274_v25, %v5825_v28 }
 0x742   :  { %v3369_v30 = vsel %vm1855_vm13, %v3318_v5, %v3368_v11  ;;  %v3449_v24 = vsel %vm1855_vm13, %v3398_v37, %v3448_v33  ;;  %v3529_v34 = vsel %vm1855_vm13, %v3478_v58, %v3528_v21  ;;  %v3376_v40 = vsel %vm1855_vm13, %v3350_v57, %v3375_v47 }
 0x743   :  { %v3277_v22 = vpop.xlane.xlu1 %3276  ;;  %v3253_v7 = vpop.xlane.xlu0 %3252  ;;  %v3456_v35 = vsel %vm1855_vm13, %v3430_v61, %v3455_v60  ;;  %v3536_v10 = vsel %vm1855_vm13, %v3510_v59, %v3535_v13 }
 0x744   :  { %v3354_v62 = vrot.slane %v3277_v22, %v5803_v46  ;;  %v3434_v9 = vrot.slane %v3277_v22, %v5809_v2  ;;  %v3514_v1 = vrot.slane %v3277_v22, %v5825_v28  ;;  %v3322_v3 = vrot.slane %v3253_v7, %v5803_v46 }
 0x745   :  { %v3402_v63 = vrot.slane %v3253_v7, %v5809_v2  ;;  %v3482_v8 = vrot.slane %v3253_v7, %v5825_v28 }
 0x746   :  { %v3377_v27 = vsel %vm1857_vm14, %v3354_v62, %v3376_v40  ;;  %v3457_v55 = vsel %vm1857_vm14, %v3434_v9, %v3456_v35  ;;  %v3537_v48 = vsel %vm1857_vm14, %v3514_v1, %v3536_v10  ;;  %v3370_v49 = vsel %vm1857_vm14, %v3322_v3, %v3369_v30 }
 0x747   :  { %v3280_v15 = vpop.xlane.xlu1 %3279  ;;  %v3256_v14 = vpop.xlane.xlu0 %3255  ;;  %v3450_v0 = vsel %vm1857_vm14, %v3402_v63, %v3449_v24  ;;  %v3530_v6 = vsel %vm1857_vm14, %v3482_v8, %v3529_v34 }
 0x748   :  { %v3358_v41 = vrot.slane %v3280_v15, %v5803_v46  ;;  %v3438_v45 = vrot.slane %v3280_v15, %v5809_v2  ;;  %v3518_v39 = vrot.slane %v3280_v15, %v5825_v28  ;;  %v3326_v54 = vrot.slane %v3256_v14, %v5803_v46 }
 0x749   :  { %v3406_v53 = vrot.slane %v3256_v14, %v5809_v2  ;;  %v3486_v20 = vrot.slane %v3256_v14, %v5825_v28 }
 0x74a   :  { %v3378_v29 = vsel %vm1859_vm15, %v3358_v41, %v3377_v27  ;;  %v3458_v56 = vsel %vm1859_vm15, %v3438_v45, %v3457_v55  ;;  %v3538_v38 = vsel %vm1859_vm15, %v3518_v39, %v3537_v48  ;;  %v3371_v31 = vsel %vm1859_vm15, %v3326_v54, %v3370_v49 }
 0x74b   :  { %v3283_v32 = vpop.xlane.xlu1 %3282  ;;  %v3259_v17 = vpop.xlane.xlu0 %3258  ;;  %v3451_v36 = vsel %vm1859_vm15, %v3406_v53, %v3450_v0  ;;  %v3531_v5 = vsel %vm1859_vm15, %v3486_v20, %v3530_v6 }
 0x74c   :  { %v3362_v19 = vrot.slane %v3283_v32, %v5803_v46  ;;  %v3442_v43 = vrot.slane %v3283_v32, %v5809_v2  ;;  %v3522_v25 = vrot.slane %v3283_v32, %v5825_v28  ;;  %v3330_v44 = vrot.slane %v3259_v17, %v5803_v46 }
 0x74d   :  { %v3410_v23 = vrot.slane %v3259_v17, %v5809_v2  ;;  %v3490_v18 = vrot.slane %v3259_v17, %v5825_v28 }
 0x74e   :  { %v3379_v37 = vsel %vm1861_vm1, %v3362_v19, %v3378_v29  ;;  %v3459_v51 = vsel %vm1861_vm1, %v3442_v43, %v3458_v56  ;;  %v3539_v50 = vsel %vm1861_vm1, %v3522_v25, %v3538_v38  ;;  %v3372_v11 = vsel %vm1861_vm1, %v3330_v44, %v3371_v31 }
 0x74f   :  { %v3286_v33 = vpop.xlane.xlu1 %3285  ;;  %v3262_v22 = vpop.xlane.xlu0 %3261  ;;  %v3452_v59 = vsel %vm1861_vm1, %v3410_v23, %v3451_v36  ;;  %v3532_v21 = vsel %vm1861_vm1, %v3490_v18, %v3531_v5 }
 0x750   :  { %v3366_v7 = vrot.slane %v3286_v33, %v5803_v46  ;;  %v3446_v58 = vrot.slane %v3286_v33, %v5809_v2  ;;  %v3526_v57 = vrot.slane %v3286_v33, %v5825_v28  ;;  %v3334_v61 = vrot.slane %v3262_v22, %v5803_v46 }
 0x751   :  { %v3414_v47 = vrot.slane %v3262_v22, %v5809_v2  ;;  %v3494_v62 = vrot.slane %v3262_v22, %v5825_v28 }
 0x752   :  { %v3380_v9 = vsel %vm1863_vm3, %v3366_v7, %v3379_v37  ;;  %v3460_v60 = vsel %vm1863_vm3, %v3446_v58, %v3459_v51  ;;  %v3540_v13 = vsel %vm1863_vm3, %v3526_v57, %v3539_v50  ;;  %v3373_v30 = vsel %vm1863_vm3, %v3334_v61, %v3372_v11 }
 0x753   :  { %v3562_v24 = vcombine.high %v3380_v9, %v6757_v4  ;;  %v3569_v46 = vrot.slane %v3380_v9, %v5201_v12  ;;  %v3628_v1 = vcombine.high %v3460_v60, %v6757_v4  ;;  %v3635_v3 = vrot.slane %v3460_v60, %v5201_v12 }
 0x754   :  { %v3694_v2 = vcombine.high %v3540_v13, %v6757_v4  ;;  %v3701_v28 = vrot.slane %v3540_v13, %v5201_v12  ;;  %v3453_v63 = vsel %vm1863_vm3, %v3414_v47, %v3452_v59  ;;  %v3533_v8 = vsel %vm1863_vm3, %v3494_v62, %v3532_v21 }
 0x755   :  { %v3576_v15 = vrot.slane %v3562_v24, %v5201_v12  ;;  %v3642_v14 = vrot.slane %v3628_v1, %v5201_v12  ;;  %v3547_v34 = vcombine.high %v3373_v30, %v6757_v4  ;;  %v3554_v40 = vrot.slane %v3373_v30, %v5201_v12 }
 0x756   :  { %v3708_v35 = vrot.slane %v3694_v2, %v5201_v12  ;;  %v3613_v10 = vcombine.high %v3453_v63, %v6757_v4  ;;  %v3620_v27 = vrot.slane %v3453_v63, %v5201_v12  ;;  %v3679_v55 = vcombine.high %v3533_v8, %v6757_v4 }
 0x757   :  { %v3561_v41 = vrot.slane %v3547_v34, %v5201_v12  ;;  %v3577_v45 = vcombine.low %v3554_v40, %v3569_v46  ;;  %v3578_v39 = vcombine.high %v3554_v40, %v3569_v46  ;;  %v3686_v54 = vrot.slane %v3533_v8, %v5201_v12 }
 0x758   :  { %v3627_v53 = vrot.slane %v3613_v10, %v5201_v12  ;;  %v3643_v20 = vcombine.low %v3620_v27, %v3635_v3  ;;  %v3644_v48 = vcombine.high %v3620_v27, %v3635_v3  ;;  %v3693_v49 = vrot.slane %v3679_v55, %v5201_v12 }
 0x759   :  { %v3585_v0 = vrot.slane %v3577_v45, %v5208_v16  ;;  %v3592_v6 = vrot.slane %v3578_v39, %v5208_v16  ;;  %v3593_v32 = vcombine.low %v3561_v41, %v3576_v15  ;;  %v3594_v17 = vcombine.high %v3561_v41, %v3576_v15 }
 0x75a   :  { %v3651_v19 = vrot.slane %v3643_v20, %v5208_v16  ;;  %v3658_v43 = vrot.slane %v3644_v48, %v5208_v16  ;;  %v3659_v25 = vcombine.low %v3627_v53, %v3642_v14  ;;  %v3660_v44 = vcombine.high %v3627_v53, %v3642_v14 }
 0x75b   :  { %v3601_v29 = vrot.slane %v3593_v32, %v5208_v16  ;;  %v3608_v56 = vrot.slane %v3594_v17, %v5208_v16  ;;  %v3709_v23 = vcombine.low %v3686_v54, %v3701_v28  ;;  %v3710_v18 = vcombine.high %v3686_v54, %v3701_v28 }
 0x75c   :  { %v3667_v38 = vrot.slane %v3659_v25, %v5208_v16  ;;  %v3674_v31 = vrot.slane %v3660_v44, %v5208_v16  ;;  %v3725_v36 = vcombine.low %v3693_v49, %v3708_v35  ;;  %v3726_v5 = vcombine.high %v3693_v49, %v3708_v35 }
 0x75d   :  { %v3717_v37 = vrot.slane %v3709_v23, %v5208_v16  ;;  %v3724_v51 = vrot.slane %v3710_v18, %v5208_v16  ;;  %v3745_v50 = vcombine.low %v3585_v0, %v3592_v6  ;;  %v4934_v11 = vcombine.high %v3585_v0, %v3592_v6 }
 0x75e   :  { %v3733_v33 = vrot.slane %v3725_v36, %v5208_v16  ;;  %v3740_v22 = vrot.slane %v3726_v5, %v5208_v16  ;;  %v3761_v7 = vcombine.low %v3601_v29, %v3608_v56  ;;  %v4935_v58 = vcombine.high %v3601_v29, %v3608_v56  ;;  %v4933_v36 = vld [vmem:[%s6719_s2 + $0x10] sm:$0xff] }
 0x75f   :  { %v3795_v57 = vcombine.low %v3651_v19, %v3658_v43  ;;  %v4936_v61 = vcombine.high %v3651_v19, %v3658_v43  ;;  %v3811_v59 = vcombine.low %v3667_v38, %v3674_v31  ;;  %v4937_v21 = vcombine.high %v3667_v38, %v3674_v31  ;;  %v4932_v38 = vld [vmem:[%s6718_s1 + $0x10] sm:$0xff] }
 0x760   :  { %v3845_v47 = vcombine.low %v3717_v37, %v3724_v51  ;;  %v4938_v62 = vcombine.high %v3717_v37, %v3724_v51  ;;  %v3861_v9 = vcombine.low %v3733_v33, %v3740_v22  ;;  %v4939_v60 = vcombine.high %v3733_v33, %v3740_v22 }
 0x761   :  { %v3752_v13 = vrot.slane %v3745_v50, %v5201_v12  ;;  %v3760_v30 = vrot.slane %v4934_v11, %v5201_v12  ;;  %v3768_v24 = vrot.slane %v3761_v7, %v5201_v12  ;;  %v3776_v46 = vrot.slane %v4935_v58, %v5201_v12 }
 0x762   :  { %v3852_v1 = vrot.slane %v3845_v47, %v5201_v12  ;;  %v3860_v3 = vrot.slane %v4938_v62, %v5201_v12  ;;  %v3868_v2 = vrot.slane %v3861_v9, %v5201_v12  ;;  %v3876_v28 = vrot.slane %v4939_v60, %v5201_v12 }
 0x763   :  { %v3777_v63 = vcombine.low %v3752_v13, %v3760_v30  ;;  %v3785_v8 = vcombine.low %v3768_v24, %v3776_v46  ;;  %v3802_v15 = vrot.slane %v3795_v57, %v5201_v12  ;;  %v3810_v14 = vrot.slane %v4936_v61, %v5201_v12 }
 0x764   :  { %v3877_v34 = vcombine.low %v3852_v1, %v3860_v3  ;;  %v3885_v40 = vcombine.low %v3868_v2, %v3876_v28  ;;  %v3818_v35 = vrot.slane %v3811_v59, %v5201_v12  ;;  %v3826_v10 = vrot.slane %v4937_v21, %v5201_v12 }
 0x765   :  { %v3784_v27 = vrot.slane %v3777_v63, %v5208_v16  ;;  %v3792_v55 = vrot.slane %v3785_v8, %v5208_v16  ;;  %v3827_v41 = vcombine.low %v3802_v15, %v3810_v14 }
 0x766   :  { %v3884_v45 = vrot.slane %v3877_v34, %v5208_v16  ;;  %v3892_v39 = vrot.slane %v3885_v40, %v5208_v16  ;;  %v3835_v54 = vcombine.low %v3818_v35, %v3826_v10 }
 0x767   :  { %v3794_v53 = vcombine.high %v3784_v27, %v3792_v55  ;;  %v3793_v20 = vcombine.low %v3784_v27, %v3792_v55  ;;  %v3834_v49 = vrot.slane %v3827_v41, %v5208_v16 }
 0x768   :  { %v3894_v48 = vcombine.high %v3884_v45, %v3892_v39  ;;  %v3842_v0 = vrot.slane %v3835_v54, %v5208_v16  ;;  %v3893_v6 = vcombine.low %v3884_v45, %v3892_v39 }
 0x76a   :  { %3902 = vrot.lane.b32.xlu1 %v3894_v48, %s5148_s8  ;;  %v3844_v32 = vcombine.high %v3834_v49, %v3842_v0  ;;  %v3843_v17 = vcombine.low %v3834_v49, %v3842_v0 }
 0x76c   :  { %v5083_v19 = vpack.i.bf16 %v3844_v32, %v3794_v53 }
 0x76e   :  { %5084 = vrot.lane.b32.xlu0 %v5083_v19, %s5148_s8  ;;  %3911 = vrot.lane.b32.xlu1 %v6776_v52, %s5148_s8 }
 0x772   :  { %4110 = vperm.xlu1 %5088, %v4933_v36  }
 0x7dc   :  { %v3903_v18 = vpop.permute.xlu1 %3902 }
 0x7dd   :  { %v3910_v31 = vsel %vm3907_vm6, %v3893_v6, %v3903_v18 }
 0x7e0   :  { %v5085_v43 = vpop.permute.xlu0 %5084  ;;  %v3912_v5 = vpop.permute.xlu1 %3911 }
 0x7e1   :  { %v5087_v25 = vunpack.i.h.bf16 %v5085_v43  ;;  %v5086_v44 = vunpack.i.l.bf16 %v5085_v43  ;;  %v3914_v37 = vsel %vm3907_vm6, %v6778_v26, %v3912_v5 }
 0x7e3   :  { %v3909_v29 = vsel %vm3907_vm6, %v3843_v17, %v5087_v25  ;;  %v3908_v56 = vsel %vm3907_vm6, %v3793_v20, %v5086_v44 }
 0x7e4   :  { %v5025_v23 = vpack.c.bf16 %v3909_v29, %v3908_v56 }
 0x7e6   :  { %5026 = vmatpush3.bf16.msra.mxu0 %v5025_v23 }
 0x7e7   :  { %4997 = vmatprep.subr.mxu0 %v6757_v4 }
 0x7ea   :  { %4998 = vmatpush3.msra.mxu0 %v3910_v31 }
 0x7eb   :  { %5000 = vmatmul.mubr.msk.f32.vlgmr.msra.gmra.mrb[2].mxu0 %vm428_vm2, %v4932_v38  ;;  %5030 = vmatprep.subr.bf16.mxu0 %v6777_v42 }
 0x7ec   :  { %5015 = vmatprep.mubr.msk.f32.mxu0 %vm5124_vm0, %v6757_v4  ;;  %vm4495_vm0 = vcmask 15360  }
 0x7f1   :  { %v4111_v35 = vpop.permute.xlu1 %4110 }
 0x8be   :  { %v3984_v51 = vpop.f32.mrb[2].mxu0 }
 0x8bf   :  { %v3985_v50 = vadd.f32 %v3984_v51, %v3914_v37  ;;  %v5001_v11 = vpop.f32.mrb[3].mxu0 }
 0x8c1   :  { %3989 = vrot.lane.b32.xlu0 %v3985_v50, %s5149_s13  ;;  %v3992_v33 = vcombine.high %v3985_v50, %v6757_v4  ;;  %v3999_v22 = vrot.slane %v3985_v50, %v5201_v12 }
 0x8c3   :  { %v4006_v57 = vrot.slane %v3992_v33, %v5201_v12 }
 0x933   :  { %v3990_v42 = vpop.permute.xlu0 %3989 }
 0x934   :  { %v4007_v7 = vcombine.high %v3990_v42, %v6757_v4  ;;  %v4014_v58 = vrot.slane %v3990_v42, %v5201_v12 }
 0x936   :  { %v4021_v61 = vrot.slane %v4007_v7, %v5201_v12  ;;  %v4022_v59 = vcombine.low %v3999_v22, %v4014_v58  ;;  %v4023_v21 = vcombine.high %v3999_v22, %v4014_v58 }
 0x938   :  { %v4030_v47 = vrot.slane %v4022_v59, %v5208_v16  ;;  %v4037_v62 = vrot.slane %v4023_v21, %v5208_v16  ;;  %v4038_v9 = vcombine.low %v4006_v57, %v4021_v61  ;;  %v4039_v60 = vcombine.high %v4006_v57, %v4021_v61 }
 0x93a   :  { %v4046_v13 = vrot.slane %v4038_v9, %v5208_v16  ;;  %v4053_v30 = vrot.slane %v4039_v60, %v5208_v16  ;;  %v4058_v24 = vcombine.low %v4030_v47, %v4037_v62  ;;  %v4941_v46 = vcombine.high %v4030_v47, %v4037_v62 }
 0x93c   :  { %v4074_v1 = vcombine.low %v4046_v13, %v4053_v30  ;;  %v4942_v3 = vcombine.high %v4046_v13, %v4053_v30  ;;  %v4065_v2 = vrot.slane %v4058_v24, %v5201_v12  ;;  %v4073_v28 = vrot.slane %v4941_v46, %v5201_v12 }
 0x93e   :  { %v4081_v63 = vrot.slane %v4074_v1, %v5201_v12  ;;  %v4089_v8 = vrot.slane %v4942_v3, %v5201_v12  ;;  %v4090_v15 = vcombine.low %v4065_v2, %v4073_v28 }
 0x940   :  { %v4098_v14 = vcombine.low %v4081_v63, %v4089_v8  ;;  %v4097_v34 = vrot.slane %v4090_v15, %v5208_v16 }
 0x942   :  { %v4105_v40 = vrot.slane %v4098_v14, %v5208_v16 }
 0x944   :  { %v4106_v10 = vcombine.low %v4097_v34, %v4105_v40  ;;  %v4107_v27 = vcombine.high %v4097_v34, %v4105_v40 }
 0x946   :  { %v4113_v55 = vadd.f32 %v4111_v35, %v4106_v10  ;;  %v4114_v41 = vadd.f32 %v4111_v35, %v4107_v27 }
 0x948   :  { %v4115_v45 = vmax.f32 %v4113_v55, 0.0  ;;  %v4116_v39 = vmax.f32 %v4114_v41, 0.0 }
 0x94a   :  { %v4135_v54 = vcombine.high %v4115_v45, %v6757_v4  ;;  %v4142_v53 = vrot.slane %v4115_v45, %v5201_v12  ;;  %v4150_v20 = vcombine.high %v4116_v39, %v6757_v4  ;;  %v4157_v48 = vrot.slane %v4116_v39, %v5201_v12  ;;  %4121 = vrot.lane.b32.xlu1 %v4116_v39, %s5120_s21 }
 0x94b   :  { %4119 = vrot.lane.b32.xlu0 %v4115_v45, %s5120_s21  ;;  %s5150_s21 = smov 2  }
 0x94c   :  { %v4149_v49 = vrot.slane %v4135_v54, %v5201_v12  ;;  %v4164_v0 = vrot.slane %v4150_v20, %v5201_v12  ;;  %v4165_v6 = vcombine.low %v4142_v53, %v4157_v48  ;;  %v4166_v32 = vcombine.high %v4142_v53, %v4157_v48 }
 0x94e   :  { %v4173_v17 = vrot.slane %v4165_v6, %v5208_v16  ;;  %v4180_v19 = vrot.slane %v4166_v32, %v5208_v16  ;;  %v4181_v43 = vcombine.low %v4149_v49, %v4164_v0  ;;  %v4182_v25 = vcombine.high %v4149_v49, %v4164_v0  ;;  %4127 = vrot.lane.b32.xlu1 %v4116_v39, %s5119_s20 }
 0x94f   :  { %4125 = vrot.lane.b32.xlu0 %v4115_v45, %s5119_s20 }
 0x950   :  { %v4189_v44 = vrot.slane %v4181_v43, %v5208_v16  ;;  %v4196_v29 = vrot.slane %v4182_v25, %v5208_v16  ;;  %v4333_v56 = vcombine.low %v4173_v17, %v4180_v19  ;;  %v4945_v23 = vcombine.high %v4173_v17, %v4180_v19 }
 0x952   :  { %v4340_v18 = vrot.slane %v4333_v56, %v5201_v12  ;;  %v4348_v38 = vrot.slane %v4945_v23, %v5201_v12  ;;  %v4349_v31 = vcombine.low %v4189_v44, %v4196_v29  ;;  %v4946_v36 = vcombine.high %v4189_v44, %v4196_v29 }
 0x954   :  { %v4356_v5 = vrot.slane %v4349_v31, %v5201_v12  ;;  %v4364_v37 = vrot.slane %v4946_v36, %v5201_v12  ;;  %v4365_v51 = vcombine.low %v4340_v18, %v4348_v38 }
 0x956   :  { %v4373_v50 = vcombine.low %v4356_v5, %v4364_v37  ;;  %v6600_v11 = vrot.slane %v4365_v51, %v5208_v16 }
 0x958   :  { %v6603_v33 = vrot.slane %v4373_v50, %v5208_v16 }
 0x95a   :  { %v4382_v42 = vcombine.high %v6600_v11, %v6603_v33  ;;  %v4381_v22 = vcombine.low %v6600_v11, %v6603_v33 }
 0x9bc   :  { %v4122_v7 = vpop.permute.xlu1 %4121 }
 0x9bd   :  { %v4216_v58 = vcombine.high %v4122_v7, %v6757_v4  ;;  %v4223_v57 = vrot.slane %v4122_v7, %v5201_v12  ;;  %v4120_v61 = vpop.permute.xlu0 %4119 }
 0x9be   :  { %v4201_v59 = vcombine.high %v4120_v61, %v6757_v4  ;;  %v4208_v21 = vrot.slane %v4120_v61, %v5201_v12 }
 0x9bf   :  { %v4230_v47 = vrot.slane %v4216_v58, %v5201_v12 }
 0x9c0   :  { %v4215_v62 = vrot.slane %v4201_v59, %v5201_v12  ;;  %v4231_v9 = vcombine.low %v4208_v21, %v4223_v57  ;;  %v4232_v60 = vcombine.high %v4208_v21, %v4223_v57  ;;  %v4128_v13 = vpop.permute.xlu1 %4127 }
 0x9c1   :  { %v4282_v30 = vcombine.high %v4128_v13, %v6757_v4  ;;  %v4289_v24 = vrot.slane %v4128_v13, %v5201_v12  ;;  %v4126_v46 = vpop.permute.xlu0 %4125 }
 0x9c2   :  { %v4239_v1 = vrot.slane %v4231_v9, %v5208_v16  ;;  %v4246_v3 = vrot.slane %v4232_v60, %v5208_v16  ;;  %v4247_v2 = vcombine.low %v4215_v62, %v4230_v47  ;;  %v4248_v28 = vcombine.high %v4215_v62, %v4230_v47  ;;  %v4944_v47 = vld [vmem:[%s6719_s2 + $0x18] sm:$0xff] }
 0x9c3   :  { %v4296_v63 = vrot.slane %v4282_v30, %v5201_v12  ;;  %v4267_v8 = vcombine.high %v4126_v46, %v6757_v4  ;;  %v4274_v15 = vrot.slane %v4126_v46, %v5201_v12 }
 0x9c4   :  { %v4255_v14 = vrot.slane %v4247_v2, %v5208_v16  ;;  %v4262_v34 = vrot.slane %v4248_v28, %v5208_v16  ;;  %v4383_v40 = vcombine.low %v4239_v1, %v4246_v3  ;;  %v4947_v35 = vcombine.high %v4239_v1, %v4246_v3 }
 0x9c5   :  { %v4281_v10 = vrot.slane %v4267_v8, %v5201_v12  ;;  %v4297_v27 = vcombine.low %v4274_v15, %v4289_v24  ;;  %v4298_v55 = vcombine.high %v4274_v15, %v4289_v24 }
 0x9c6   :  { %v4390_v41 = vrot.slane %v4383_v40, %v5201_v12  ;;  %v4398_v45 = vrot.slane %v4947_v35, %v5201_v12  ;;  %v4399_v39 = vcombine.low %v4255_v14, %v4262_v34  ;;  %v4948_v54 = vcombine.high %v4255_v14, %v4262_v34 }
 0x9c7   :  { %v4305_v53 = vrot.slane %v4297_v27, %v5208_v16  ;;  %v4312_v20 = vrot.slane %v4298_v55, %v5208_v16  ;;  %v4313_v48 = vcombine.low %v4281_v10, %v4296_v63  ;;  %v4314_v49 = vcombine.high %v4281_v10, %v4296_v63 }
 0x9c8   :  { %v4406_v0 = vrot.slane %v4399_v39, %v5201_v12  ;;  %v4414_v6 = vrot.slane %v4948_v54, %v5201_v12  ;;  %v4415_v32 = vcombine.low %v4390_v41, %v4398_v45 }
 0x9c9   :  { %v4321_v17 = vrot.slane %v4313_v48, %v5208_v16  ;;  %v4328_v19 = vrot.slane %v4314_v49, %v5208_v16  ;;  %v4433_v43 = vcombine.low %v4305_v53, %v4312_v20  ;;  %v4949_v25 = vcombine.high %v4305_v53, %v4312_v20 }
 0x9ca   :  { %v4423_v44 = vcombine.low %v4406_v0, %v4414_v6  ;;  %v4422_v38 = vrot.slane %v4415_v32, %v5208_v16 }
 0x9cb   :  { %v4440_v29 = vrot.slane %v4433_v43, %v5201_v12  ;;  %v4448_v56 = vrot.slane %v4949_v25, %v5201_v12  ;;  %v4449_v23 = vcombine.low %v4321_v17, %v4328_v19  ;;  %v4950_v18 = vcombine.high %v4321_v17, %v4328_v19 }
 0x9cc   :  { %v4430_v31 = vrot.slane %v4423_v44, %v5208_v16 }
 0x9cd   :  { %v4456_v36 = vrot.slane %v4449_v23, %v5201_v12  ;;  %v4464_v5 = vrot.slane %v4950_v18, %v5201_v12  ;;  %v4465_v37 = vcombine.low %v4440_v29, %v4448_v56 }
 0x9ce   :  { %v4432_v51 = vcombine.high %v4422_v38, %v4430_v31  ;;  %v4431_v50 = vcombine.low %v4422_v38, %v4430_v31 }
 0x9cf   :  { %v4473_v7 = vcombine.low %v4456_v36, %v4464_v5  ;;  %v4472_v57 = vrot.slane %v4465_v37, %v5208_v16 }
 0x9d0   :  { %v5089_v58 = vpack.i.bf16 %v4432_v51, %v4382_v42 }
 0x9d1   :  { %v4480_v61 = vrot.slane %v4473_v7, %v5208_v16 }
 0x9d2   :  { %5090 = vrot.lane.b32.xlu0 %v5089_v58, %s5150_s21 }
 0x9d3   :  { %v4482_v59 = vcombine.high %v4472_v57, %v4480_v61  ;;  %v4481_v21 = vcombine.low %v4472_v57, %v4480_v61  ;;  %v4811_v57 = vld [vmem:[%s6720_s3] sm:$0xff]  ;;  %v4812_v61 = vld [vmem:[%s6720_s3 + $0x8] sm:$0xff]  ;;  %s5152_s3 = smov 6  }
 0x9d5   :  { %4490 = vrot.lane.b32.xlu1 %v4482_v59, %s5150_s21 }
 0x9d6   :  { %4499 = vrot.lane.b32.xlu0 %v6776_v52, %s5150_s21  ;;  %v4943_v52 = vld [vmem:[%s6718_s1 + $0x18] sm:$0xff] }
 0x9da   :  { %4698 = vperm.xlu0 %5077, %v4944_v47  }
 0xa44   :  { %v5091_v42 = vpop.permute.xlu0 %5090 }
 0xa45   :  { %v5093_v62 = vunpack.i.h.bf16 %v5091_v42  ;;  %v5092_v9 = vunpack.i.l.bf16 %v5091_v42  ;;  %v5031_v42 = vpack.c.bf16 %v4812_v61, %v4811_v57 }
 0xa47   :  { %v4497_v60 = vsel %vm4495_vm0, %v4431_v50, %v5093_v62  ;;  %v4496_v13 = vsel %vm4495_vm0, %v4381_v22, %v5092_v9  ;;  %v4491_v24 = vpop.permute.xlu1 %4490  ;;  %5032 = vmatpush3.bf16.msra.mxu0 %v5031_v42 }
 0xa48   :  { %v5028_v30 = vpack.c.bf16 %v4497_v60, %v4496_v13  ;;  %v4498_v46 = vsel %vm4495_vm0, %v4481_v21, %v4491_v24  ;;  %v4500_v1 = vpop.permute.xlu0 %4499 }
 0xa49   :  { %v4502_v11 = vsel %vm4495_vm0, %v6778_v26, %v4500_v1 }
 0xa4a   :  { %5029 = vmatpush3.bf16.msra.mxu1 %v5028_v30 }
 0xa4b   :  { %5006 = vmatprep.subr.mxu1 %v6757_v4 }
 0xa4e   :  { %5007 = vmatpush3.msra.mxu1 %v4498_v46 }
 0xa4f   :  { %5009 = vmatmul.mubr.msk.f32.vlgmr.msra.gmra.mrb[2].mxu1 %vm428_vm2, %v4943_v52  ;;  %vm4801_vm2 = vcmask 48128  }
 0xa59   :  { %v4699_v29 = vpop.permute.xlu0 %4698 }
 0xb22   :  { %v4572_v33 = vpop.f32.mrb[2].mxu1 }
 0xb23   :  { %v4573_v22 = vadd.f32 %v4572_v33, %v4502_v11  ;;  %v5010_v3 = vpop.f32.mrb[3].mxu1 }
 0xb25   :  { %4577 = vrot.lane.b32.xlu1 %v4573_v22, %s5119_s20  ;;  %v4580_v2 = vcombine.high %v4573_v22, %v6757_v4  ;;  %v4587_v63 = vrot.slane %v4573_v22, %v5201_v12 }
 0xb27   :  { %v4594_v14 = vrot.slane %v4580_v2, %v5201_v12 }
 0xb97   :  { %v4578_v28 = vpop.permute.xlu1 %4577 }
 0xb98   :  { %v4595_v8 = vcombine.high %v4578_v28, %v6757_v4  ;;  %v4602_v15 = vrot.slane %v4578_v28, %v5201_v12 }
 0xb9a   :  { %v4609_v34 = vrot.slane %v4595_v8, %v5201_v12  ;;  %v4610_v40 = vcombine.low %v4587_v63, %v4602_v15  ;;  %v4611_v26 = vcombine.high %v4587_v63, %v4602_v15 }
 0xb9c   :  { %v4618_v35 = vrot.slane %v4610_v40, %v5208_v16  ;;  %v4625_v10 = vrot.slane %v4611_v26, %v5208_v16  ;;  %v4626_v27 = vcombine.low %v4594_v14, %v4609_v34  ;;  %v4627_v55 = vcombine.high %v4594_v14, %v4609_v34  ;;  %v4954_v14 = vld [vmem:[%s6721_s4] ss:$0 sm:$0xff] }
 0xb9e   :  { %v4634_v41 = vrot.slane %v4626_v27, %v5208_v16  ;;  %v4641_v45 = vrot.slane %v4627_v55, %v5208_v16  ;;  %v4646_v39 = vcombine.low %v4618_v35, %v4625_v10  ;;  %v4952_v54 = vcombine.high %v4618_v35, %v4625_v10 }
 0xba0   :  { %v4653_v53 = vrot.slane %v4646_v39, %v5201_v12  ;;  %v4661_v20 = vrot.slane %v4952_v54, %v5201_v12  ;;  %v4662_v48 = vcombine.low %v4634_v41, %v4641_v45  ;;  %v4953_v49 = vcombine.high %v4634_v41, %v4641_v45 }
 0xba2   :  { %v4669_v0 = vrot.slane %v4662_v48, %v5201_v12  ;;  %v4677_v6 = vrot.slane %v4953_v49, %v5201_v12  ;;  %v4678_v32 = vcombine.low %v4653_v53, %v4661_v20 }
 0xba4   :  { %v4686_v17 = vcombine.low %v4669_v0, %v4677_v6  ;;  %v4685_v19 = vrot.slane %v4678_v32, %v5208_v16 }
 0xba6   :  { %v4693_v43 = vrot.slane %v4686_v17, %v5208_v16 }
 0xba8   :  { %v4694_v25 = vcombine.low %v4685_v19, %v4693_v43  ;;  %v4695_v44 = vcombine.high %v4685_v19, %v4693_v43 }
 0xbaa   :  { %v4701_v56 = vadd.f32 %v4699_v29, %v4694_v25  ;;  %v4702_v23 = vadd.f32 %v4699_v29, %v4695_v44 }
 0xbac   :  { %v4703_v18 = vmax.f32 %v4701_v56, 0.0  ;;  %v4704_v38 = vmax.f32 %v4702_v23, 0.0 }
 0xbae   :  { %v4712_v31 = vrot.slane %v4703_v18, %v5201_v12  ;;  %v4727_v36 = vrot.slane %v4704_v38, %v5201_v12  ;;  %v4705_v5 = vcombine.high %v4703_v18, %v6757_v4  ;;  %v4720_v37 = vcombine.high %v4704_v38, %v6757_v4 }
 0xbb0   :  { %v4736_v51 = vcombine.high %v4712_v31, %v4727_v36  ;;  %v4735_v50 = vcombine.low %v4712_v31, %v4727_v36  ;;  %v4719_v7 = vrot.slane %v4705_v5, %v5201_v12  ;;  %v4734_v58 = vrot.slane %v4720_v37, %v5201_v12 }
 0xbb2   :  { %v4750_v59 = vrot.slane %v4736_v51, %v5208_v16  ;;  %v4743_v21 = vrot.slane %v4735_v50, %v5208_v16  ;;  %v4751_v47 = vcombine.low %v4719_v7, %v4734_v58  ;;  %v4752_v9 = vcombine.high %v4719_v7, %v4734_v58 }
 0xbb4   :  { %4776 = vrot.lane.b32.xlu0 %v4750_v59, %s5148_s8  ;;  %v4767_v62 = vcombine.high %v4743_v21, %v6757_v4  ;;  %v4759_v12 = vrot.slane %v4751_v47, %v5208_v16  ;;  %v4768_v60 = vcombine.high %v4750_v59, %v6757_v4  ;;  %v4766_v13 = vrot.slane %v4752_v9, %v5208_v16 }
 0xbb6   :  { %4772 = vrot.lane.b32.xlu1 %v4767_v62, %s5150_s21  ;;  %v4769_v30 = vcombine.high %v4759_v12, %v6757_v4  ;;  %v4770_v24 = vcombine.high %v4766_v13, %v6757_v4 }
 0xbb8   :  { %4784 = vrot.lane.b32.xlu0 %v4759_v12, %s5151_s19 }
 0xbba   :  { %4780 = vrot.lane.b32.xlu1 %v4768_v60, %s5152_s3 }
 0xbbc   :  { %4792 = vrot.lane.b32.xlu0 %v4766_v13, %s5153_s22 }
 0xbbe   :  { %4788 = vrot.lane.b32.xlu1 %v4769_v30, %s5154_s23 }
 0xbc2   :  { %4796 = vrot.lane.b32.xlu1 %v4770_v24, %s5155_s24 }
 0xc26   :  { %v4777_v52 = vpop.permute.xlu0 %4776 }
 0xc28   :  { %v4773_v46 = vpop.permute.xlu1 %4772 }
 0xc29   :  { %v4799_v1 = vsel %vm4495_vm0, %v4743_v21, %v4773_v46 }
 0xc2a   :  { %v4800_v11 = vsel %vm3907_vm6, %v4799_v1, %v4777_v52  ;;  %v4785_v22 = vpop.permute.xlu0 %4784 }
 0xc2c   :  { %v4781_v33 = vpop.permute.xlu1 %4780 }
 0xc2d   :  { %v4802_v16 = vsel %vm4801_vm2, %v4800_v11, %v4781_v33 }
 0xc2e   :  { %v4804_v3 = vsel %vm4803_vm7, %v4802_v16, %v4785_v22  ;;  %v4793_v4 = vpop.permute.xlu0 %4792 }
 0xc30   :  { %v4789_v2 = vpop.permute.xlu1 %4788 }
 0xc31   :  { %v4806_v28 = vsel %vm4805_vm8, %v4804_v3, %v4789_v2 }
 0xc32   :  { %v4808_v63 = vsel %vm4807_vm9, %v4806_v28, %v4793_v4 }
 0xc34   :  { %v4797_v8 = vpop.permute.xlu1 %4796 }
 0xc35   :  { %v4810_v15 = vsel %vm4809_vm10, %v4808_v63, %v4797_v8 }
 0xc36   :  { %5016 = vmatmul.mubr.msk.f32.vlgmr.msra.gmra.mrb[4].mxu0 %vm4820_vm11, %v4810_v15 }
 0xd09   :  { %v4890_v34 = vpop.f32.mrb[4].mxu0 }
 0xd0a   :  { %v4891_v40 = vadd.f32 %v4954_v14, %v4890_v34  ;;  %v5017_v26 = vpop.f32.mrb[5].mxu0 }
 0xd0c   :  { %4895 = vst.msk [vmem:[#allocation2] sm:$0x3] %vm4894_vm12, %v4891_v40 }
 0xd0d   :  { %5105 = shalt.err (!%p5102_p4)
}
 0xd0e   :  { %s5106_s6 = scalar_lea.hbm %s6722_s5, 32 }
 0xd0f   :  { %p5107_p5 = scmp.ne.s32.totalorder %s6722_s5, %s5106_s6  ;;  %p5110_p6 = scmp.lt.u32.totalorder %s5106_s6, %s6722_s5 }
 0xd11   :  { %p5112_p7 = pnand %p5110_p6, %p5107_p5 }
 0xd13   :  { %5115 = shalt.err (!%p5112_p7)
}
 0xd14   :  { %4905 = dma.vmem_to_hbm [thread:$0]  %s4903_s0, 32, %s6722_s5, [#allocation3]  }
 0xd15   :  { %5116 = dma.done.wait [#allocation3], 32  }
 0xd16   :  { %5117 = vsyncadd [#allocation3], 4294967264 }
 0xd17   :  { %4909 = vsyncpa [#allocation3], 1 }

</bundles_post_ra>
